<compile_context>
chip_gen: v5e
topology: v5e:2x2
jax: 0.10.0
libtpu: 0.0.40
codegen_flags: <defaults>
</compile_context>

<pallas_src>
import jax
import jax.numpy as jnp
from jax.experimental import pallas as pl
from jax.experimental.pallas import tpu as pltpu


def _gcn_kernel(adj_ref, x_ref,
                w1n_ref, w1s_ref, b1_ref,
                w2n_ref, w2s_ref, b2_ref,
                wd_ref, bd_ref,
                out_ref):
    """One grid step = Bt graphs, flattened to M = Bt*N node rows."""
    adj = adj_ref[...]                      # (M, K) i32, pre-masked, block-local ids
    x = x_ref[...]                          # (M, F) bf16
    M, K = adj.shape
    Bt = out_ref.shape[0]
    N = M // Bt

    # Block-diagonal adjacency (M, M), built directly in bf16.  Invalid
    # neighbor slots were remapped host-side to the sentinel M, which never
    # matches a column id, so each slot costs a single equality test.
    col_ids = jax.lax.broadcasted_iota(jnp.int32, (M, M), 1)
    A = (col_ids == adj[:, 0:1]).astype(jnp.bfloat16)
    for k in range(1, K):                   # K static & tiny -> fully unrolled
        A = A + (col_ids == adj[:, k:k + 1]).astype(jnp.bfloat16)

    # --- GraphConv 1 (BN + bias folded into w/b) + ReLU ----------------------
    # Reassociated: h = (A @ x) @ W_neigh + x @ W_self  (no lane-dim concat).
    # TODO(synk): deepchem GraphConv uses a per-degree weight bank (W_list /
    # b_list); collapsed here to a single neighbor weight + self weight.
    neigh = jnp.dot(A, x, preferred_element_type=jnp.float32)        # (M, F)
    h = (jnp.dot(neigh.astype(jnp.bfloat16), w1n_ref[...],
                 preferred_element_type=jnp.float32)
         + jnp.dot(x, w1s_ref[...], preferred_element_type=jnp.float32)
         + b1_ref[...])
    h = jnp.maximum(h, 0.0)                                          # (M, H) f32
    h_b = h.astype(jnp.bfloat16)

    # --- GraphConv 2 (folded BN) + ReLU --------------------------------------
    neigh2 = jnp.dot(A, h_b, preferred_element_type=jnp.float32)     # (M, H)
    h2 = (jnp.dot(neigh2.astype(jnp.bfloat16), w2n_ref[...],
                  preferred_element_type=jnp.float32)
          + jnp.dot(h_b, w2s_ref[...], preferred_element_type=jnp.float32)
          + b2_ref[...])
    h2 = jnp.maximum(h2, 0.0)                                        # (M, H) f32

    # Dropout = identity (eval).  Node mean: 1/N is folded into wd, so only a
    # per-graph node sum remains here.
    H = h2.shape[-1]
    g = jnp.sum(h2.reshape(Bt, N, H), axis=1)                        # (Bt, H) f32
    out_ref[...] = (jnp.dot(g, wd_ref[...],
                            preferred_element_type=jnp.float32)
                    + bd_ref[...])                                   # (Bt, T)


def _fold_bn(gamma, beta, mean, var, eps=1e-5):
    scale = gamma / jnp.sqrt(var + eps)
    shift = beta - mean * scale
    return scale, shift


def _prepare_params(params, n_nodes):
    """Fold BN + bias into the GraphConv weights and 1/N into the dense head."""
    s1, t1 = _fold_bn(params["bn1_gamma"], params["bn1_beta"],
                      params["bn1_mean"], params["bn1_var"])
    s2, t2 = _fold_bn(params["bn2_gamma"], params["bn2_beta"],
                      params["bn2_mean"], params["bn2_var"])
    w1n = (params["w1_neigh"] * s1[None, :]).astype(jnp.bfloat16)    # (F, H)
    w1s = (params["w1_self"] * s1[None, :]).astype(jnp.bfloat16)     # (F, H)
    b1 = ((params["b1"] * s1 + t1)[None, :]).astype(jnp.float32)     # (1, H)
    w2n = (params["w2_neigh"] * s2[None, :]).astype(jnp.bfloat16)    # (H, H)
    w2s = (params["w2_self"] * s2[None, :]).astype(jnp.bfloat16)     # (H, H)
    b2 = ((params["b2"] * s2 + t2)[None, :]).astype(jnp.float32)     # (1, H)
    wd = (params["w_dense"] / n_nodes).astype(jnp.float32)           # (H, T)
    bd = params["b_dense"][None, :].astype(jnp.float32)              # (1, T)
    return w1n, w1s, b1, w2n, w2s, b2, wd, bd


def _pick_block_b(batch, block_b):
    """Large blocks to fill the MXU, but keep >= 2 grid steps when possible so
    dimension_semantics=("parallel",) has work for both v7x TensorCores."""
    bt = max(1, min(block_b, batch))
    if batch >= 16 and batch // bt < 2:
        bt = batch // 2
    # multiple of 8 so every (Bt..., lane) block satisfies the (8, 128) rule
    return max(8, ((bt + 7) // 8) * 8)


def graph_conv_net(x, adjacency_list, degree_list, params, *, block_b=32):
    B, N, F = x.shape
    K = adjacency_list.shape[-1]
    Bt = _pick_block_b(B, block_b)
    B_pad = pl.cdiv(B, Bt) * Bt
    pad = B_pad - B
    if pad:
        x = jnp.pad(x, ((0, pad), (0, 0), (0, 0)))
        adjacency_list = jnp.pad(adjacency_list, ((0, pad), (0, 0), (0, 0)))
        degree_list = jnp.pad(degree_list, ((0, pad), (0, 0)))

    w1n, w1s, b1, w2n, w2s, b2, wd, bd = _prepare_params(params, N)
    H = b1.shape[-1]
    T = bd.shape[-1]
    M = Bt * N

    # Host-side preprocessing (trivially fused by XLA):
    #  * fold degree mask into adjacency (invalid slot -> sentinel M)
    #  * add block-local graph offset so the kernel builds a block-diagonal A
    #  * flatten the node axis -> clean 2-D (sublane, lane) blocks for the DMA
    k_ids = jnp.arange(K, dtype=jnp.int32)[None, None, :]
    valid = k_ids < degree_list[:, :, None].astype(jnp.int32)
    local = (jnp.arange(B_pad, dtype=jnp.int32) % Bt)[:, None, None]
    adj_blk = jnp.where(valid,
                        adjacency_list.astype(jnp.int32) + local * N,
                        jnp.int32(M))
    adj_flat = adj_blk.reshape(B_pad * N, K)
    x_flat = x.astype(jnp.bfloat16).reshape(B_pad * N, F)

    def whole(r, c):
        # constant index_map: weights stay resident across grid steps
        # (pl.Buffered(1) would drop the spare buffer; skipped for portability)
        return pl.BlockSpec((r, c), lambda b: (0, 0))

    out = pl.pallas_call(
        _gcn_kernel,
        out_shape=jax.ShapeDtypeStruct((B_pad, T), jnp.float32),
        grid=(B_pad // Bt,),
        in_specs=[
            pl.BlockSpec((M, K), lambda b: (b, 0)),   # masked block-local adj
            pl.BlockSpec((M, F), lambda b: (b, 0)),   # node features (bf16)
            whole(F, H), whole(F, H), whole(1, H),    # layer 1 (BN folded)
            whole(H, H), whole(H, H), whole(1, H),    # layer 2 (BN folded)
            whole(H, T), whole(1, T),                 # dense head (1/N folded)
        ],
        out_specs=pl.BlockSpec((Bt, T), lambda b: (b, 0)),
        compiler_params=pltpu.CompilerParams(
            dimension_semantics=("parallel",)),       # megacore on v7x
    )(adj_flat, x_flat, w1n, w1s, b1, w2n, w2s, b2, wd, bd)
    return out[:B]


def reference_forward(x, adjacency_list, degree_list, params):
    """Pure-JAX reference matching the kernel's numeric path (folded BN,
    reassociated neigh/self weights, bf16 MXU inputs, f32 accumulation)."""
    B, N, _ = x.shape
    K = adjacency_list.shape[-1]
    w1n, w1s, b1, w2n, w2s, b2, wd, bd = _prepare_params(params, N)

    mask = (jnp.arange(K)[None, None, :] < degree_list[:, :, None])
    onehot = jax.nn.one_hot(adjacency_list, N, dtype=jnp.float32)      # (B,N,K,N)
    A = jnp.sum(onehot * mask[..., None].astype(jnp.float32), axis=2)  # (B,N,N)
    A = A.astype(jnp.bfloat16)
    xb = x.astype(jnp.bfloat16)

    neigh = jnp.einsum("bij,bjf->bif", A, xb,
                       preferred_element_type=jnp.float32)
    h = (jnp.einsum("bnf,fh->bnh", neigh.astype(jnp.bfloat16), w1n,
                    preferred_element_type=jnp.float32)
         + jnp.einsum("bnf,fh->bnh", xb, w1s,
                      preferred_element_type=jnp.float32) + b1)
    h = jnp.maximum(h, 0.0)
    hb = h.astype(jnp.bfloat16)

    neigh2 = jnp.einsum("bij,bjf->bif", A, hb,
                        preferred_element_type=jnp.float32)
    h2 = (jnp.einsum("bnh,hk->bnk", neigh2.astype(jnp.bfloat16), w2n,
                     preferred_element_type=jnp.float32)
          + jnp.einsum("bnh,hk->bnk", hb, w2s,
                       preferred_element_type=jnp.float32) + b2)
    h2 = jnp.maximum(h2, 0.0)

    g = jnp.sum(h2, axis=1)
    return g @ wd + bd


def init_params(key, n_features, hidden_dim, n_tasks):
    ks = jax.random.split(key, 12)
    sc_in = 1.0 / jnp.sqrt(n_features)
    sc_h = 1.0 / jnp.sqrt(hidden_dim)
    return {
        "w1_neigh": jax.random.normal(ks[0], (n_features, hidden_dim), jnp.float32) * sc_in,
        "w1_self":  jax.random.normal(ks[1], (n_features, hidden_dim), jnp.float32) * sc_in,
        "b1":       jax.random.normal(ks[2], (hidden_dim,), jnp.float32) * 0.01,
        "bn1_gamma": jax.random.uniform(ks[3], (hidden_dim,), jnp.float32, 0.5, 1.5),
        "bn1_beta":  jax.random.normal(ks[4], (hidden_dim,), jnp.float32) * 0.1,
        "bn1_mean":  jax.random.normal(ks[5], (hidden_dim,), jnp.float32) * 0.1,
        "bn1_var":   jax.random.uniform(ks[5], (hidden_dim,), jnp.float32, 0.5, 1.5),
        "w2_neigh": jax.random.normal(ks[6], (hidden_dim, hidden_dim), jnp.float32) * sc_h,
        "w2_self":  jax.random.normal(ks[7], (hidden_dim, hidden_dim), jnp.float32) * sc_h,
        "b2":       jax.random.normal(ks[8], (hidden_dim,), jnp.float32) * 0.01,
        "bn2_gamma": jax.random.uniform(ks[9], (hidden_dim,), jnp.float32, 0.5, 1.5),
        "bn2_beta":  jax.random.normal(ks[9], (hidden_dim,), jnp.float32) * 0.1,
        "bn2_mean":  jax.random.normal(ks[10], (hidden_dim,), jnp.float32) * 0.1,
        "bn2_var":   jax.random.uniform(ks[10], (hidden_dim,), jnp.float32, 0.5, 1.5),
        "w_dense":  jax.random.normal(ks[11], (hidden_dim, n_tasks), jnp.float32) * sc_h,
        "b_dense":  jax.random.normal(ks[11], (n_tasks,), jnp.float32) * 0.01,
    }


if __name__ == "__main__":
    B, N, K = 16, 16, 4           # batch of graphs, nodes per graph, max neighbors
    n_features, hidden_dim, n_tasks = 32, 32, 3

    key = jax.random.PRNGKey(0)
    kx, kadj, kdeg, kp = jax.random.split(key, 4)

    x = jax.random.normal(kx, (B, N, n_features), jnp.float32)
    adjacency_list = jax.random.randint(kadj, (B, N, K), 0, N, jnp.int32)
    degree_list = jax.random.randint(kdeg, (B, N), 0, K + 1, jnp.int32)
    params = init_params(kp, n_features, hidden_dim, n_tasks)

    out = graph_conv_net(x, adjacency_list, degree_list, params)
    out = jax.block_until_ready(out)

    ref = reference_forward(x, adjacency_list, degree_list, params)
    assert out.shape == (B, n_tasks)
    assert jnp.allclose(out, ref, atol=2e-3, rtol=2e-3), (out, ref)

    print("KERNEL_OK")
</pallas_src>

<mosaic_0001>
module attributes {stable_mosaic.version = 11 : i64} {
  func.func @_gcn_kernel(%arg0: i32, %arg1: memref<128x4xi32, #tpu.memory_space<vmem>>, %arg2: memref<128x32xbf16, #tpu.memory_space<vmem>>, %arg3: memref<32x32xbf16, #tpu.memory_space<vmem>>, %arg4: memref<32x32xbf16, #tpu.memory_space<vmem>>, %arg5: memref<1x32xf32, #tpu.memory_space<vmem>>, %arg6: memref<32x32xbf16, #tpu.memory_space<vmem>>, %arg7: memref<32x32xbf16, #tpu.memory_space<vmem>>, %arg8: memref<1x32xf32, #tpu.memory_space<vmem>>, %arg9: memref<32x3xf32, #tpu.memory_space<vmem>>, %arg10: memref<1x3xf32, #tpu.memory_space<vmem>>, %arg11: memref<8x3xf32, #tpu.memory_space<vmem>>) attributes {dimension_semantics = [#tpu.dimension_semantics<parallel>], iteration_bounds = array<i64: 2>, scalar_prefetch = 0 : i64, scratch_operands = 0 : i64, tpu.core_type = #tpu.core_type<tc>, window_params = [{transform_indices = @transform_0, window_bounds = array<i64: 128, 4>}, {transform_indices = @transform_1, window_bounds = array<i64: 128, 32>}, {pipeline_mode = #tpu.pipeline_mode<synchronous>, transform_indices = @transform_2, window_bounds = array<i64: 32, 32>}, {pipeline_mode = #tpu.pipeline_mode<synchronous>, transform_indices = @transform_3, window_bounds = array<i64: 32, 32>}, {pipeline_mode = #tpu.pipeline_mode<synchronous>, transform_indices = @transform_4, window_bounds = array<i64: 1, 32>}, {pipeline_mode = #tpu.pipeline_mode<synchronous>, transform_indices = @transform_5, window_bounds = array<i64: 32, 32>}, {pipeline_mode = #tpu.pipeline_mode<synchronous>, transform_indices = @transform_6, window_bounds = array<i64: 32, 32>}, {pipeline_mode = #tpu.pipeline_mode<synchronous>, transform_indices = @transform_7, window_bounds = array<i64: 1, 32>}, {pipeline_mode = #tpu.pipeline_mode<synchronous>, transform_indices = @transform_8, window_bounds = array<i64: 32, 3>}, {pipeline_mode = #tpu.pipeline_mode<synchronous>, transform_indices = @transform_9, window_bounds = array<i64: 1, 3>}, {transform_indices = @transform_10, window_bounds = array<i64: 8, 3>}]} {
    %c0 = arith.constant 0 : index
    %c0_0 = arith.constant 0 : index
    %0 = vector.load %arg1[%c0, %c0_0] : memref<128x4xi32, #tpu.memory_space<vmem>>, vector<128x4xi32>
    %c0_1 = arith.constant 0 : index
    %c0_2 = arith.constant 0 : index
    %1 = vector.load %arg2[%c0_1, %c0_2] : memref<128x32xbf16, #tpu.memory_space<vmem>>, vector<128x32xbf16>
    %2 = tpu.iota {dimensions = array<i32: 1>} : vector<128x128xi32>
    %3 = vector.extract_strided_slice %0 {offsets = [0, 0], sizes = [128, 1], strides = [1, 1]} : vector<128x4xi32> to vector<128x1xi32>
    %4 = vector.broadcast %3 : vector<128x1xi32> to vector<128x128xi32>
    %5 = arith.cmpi eq, %2, %4 : vector<128x128xi32>
    %6 = arith.extui %5 : vector<128x128xi1> to vector<128x128xi32>
    %7 = arith.sitofp %6 : vector<128x128xi32> to vector<128x128xf32>
    %8 = arith.truncf %7 : vector<128x128xf32> to vector<128x128xbf16>
    %9 = vector.extract_strided_slice %0 {offsets = [0, 1], sizes = [128, 1], strides = [1, 1]} : vector<128x4xi32> to vector<128x1xi32>
    %10 = vector.broadcast %9 : vector<128x1xi32> to vector<128x128xi32>
    %11 = arith.cmpi eq, %2, %10 : vector<128x128xi32>
    %12 = arith.extui %11 : vector<128x128xi1> to vector<128x128xi32>
    %13 = arith.sitofp %12 : vector<128x128xi32> to vector<128x128xf32>
    %14 = arith.truncf %13 : vector<128x128xf32> to vector<128x128xbf16>
    %15 = arith.addf %8, %14 : vector<128x128xbf16>
    %16 = vector.extract_strided_slice %0 {offsets = [0, 2], sizes = [128, 1], strides = [1, 1]} : vector<128x4xi32> to vector<128x1xi32>
    %17 = vector.broadcast %16 : vector<128x1xi32> to vector<128x128xi32>
    %18 = arith.cmpi eq, %2, %17 : vector<128x128xi32>
    %19 = arith.extui %18 : vector<128x128xi1> to vector<128x128xi32>
    %20 = arith.sitofp %19 : vector<128x128xi32> to vector<128x128xf32>
    %21 = arith.truncf %20 : vector<128x128xf32> to vector<128x128xbf16>
    %22 = arith.addf %15, %21 : vector<128x128xbf16>
    %23 = vector.extract_strided_slice %0 {offsets = [0, 3], sizes = [128, 1], strides = [1, 1]} : vector<128x4xi32> to vector<128x1xi32>
    %24 = vector.broadcast %23 : vector<128x1xi32> to vector<128x128xi32>
    %25 = arith.cmpi eq, %2, %24 : vector<128x128xi32>
    %26 = arith.extui %25 : vector<128x128xi1> to vector<128x128xi32>
    %27 = arith.sitofp %26 : vector<128x128xi32> to vector<128x128xf32>
    %28 = arith.truncf %27 : vector<128x128xf32> to vector<128x128xbf16>
    %29 = arith.addf %22, %28 : vector<128x128xbf16>
    %cst = arith.constant dense<0.000000e+00> : vector<128x32xf32>
    %30 = tpu.matmul %29, %1, %cst {dimension_numbers = #tpu.dot_dimension_numbers<[1], [0], [0], [1], [0, 0, 1, 1], [], []>} : vector<128x128xbf16>, vector<128x32xbf16>, vector<128x32xf32> -> vector<128x32xf32>
    %31 = arith.truncf %30 : vector<128x32xf32> to vector<128x32xbf16>
    %c0_3 = arith.constant 0 : index
    %c0_4 = arith.constant 0 : index
    %32 = vector.load %arg3[%c0_3, %c0_4] : memref<32x32xbf16, #tpu.memory_space<vmem>>, vector<32x32xbf16>
    %cst_5 = arith.constant dense<0.000000e+00> : vector<128x32xf32>
    %33 = tpu.matmul %31, %32, %cst_5 {dimension_numbers = #tpu.dot_dimension_numbers<[1], [0], [0], [1], [0, 0, 1, 1], [], []>} : vector<128x32xbf16>, vector<32x32xbf16>, vector<128x32xf32> -> vector<128x32xf32>
    %c0_6 = arith.constant 0 : index
    %c0_7 = arith.constant 0 : index
    %34 = vector.load %arg4[%c0_6, %c0_7] : memref<32x32xbf16, #tpu.memory_space<vmem>>, vector<32x32xbf16>
    %cst_8 = arith.constant dense<0.000000e+00> : vector<128x32xf32>
    %35 = tpu.matmul %1, %34, %cst_8 {dimension_numbers = #tpu.dot_dimension_numbers<[1], [0], [0], [1], [0, 0, 1, 1], [], []>} : vector<128x32xbf16>, vector<32x32xbf16>, vector<128x32xf32> -> vector<128x32xf32>
    %36 = arith.addf %33, %35 : vector<128x32xf32>
    %c0_9 = arith.constant 0 : index
    %c0_10 = arith.constant 0 : index
    %37 = vector.load %arg5[%c0_9, %c0_10] : memref<1x32xf32, #tpu.memory_space<vmem>>, vector<1x32xf32>
    %38 = vector.broadcast %37 : vector<1x32xf32> to vector<128x32xf32>
    %39 = arith.addf %36, %38 : vector<128x32xf32>
    %cst_11 = arith.constant 0.000000e+00 : f32
    %40 = vector.broadcast %cst_11 : f32 to vector<128x32xf32>
    %41 = arith.maximumf %39, %40 : vector<128x32xf32>
    %42 = arith.truncf %41 : vector<128x32xf32> to vector<128x32xbf16>
    %cst_12 = arith.constant dense<0.000000e+00> : vector<128x32xf32>
    %43 = tpu.matmul %29, %42, %cst_12 {dimension_numbers = #tpu.dot_dimension_numbers<[1], [0], [0], [1], [0, 0, 1, 1], [], []>} : vector<128x128xbf16>, vector<128x32xbf16>, vector<128x32xf32> -> vector<128x32xf32>
    %44 = arith.truncf %43 : vector<128x32xf32> to vector<128x32xbf16>
    %c0_13 = arith.constant 0 : index
    %c0_14 = arith.constant 0 : index
    %45 = vector.load %arg6[%c0_13, %c0_14] : memref<32x32xbf16, #tpu.memory_space<vmem>>, vector<32x32xbf16>
    %cst_15 = arith.constant dense<0.000000e+00> : vector<128x32xf32>
    %46 = tpu.matmul %44, %45, %cst_15 {dimension_numbers = #tpu.dot_dimension_numbers<[1], [0], [0], [1], [0, 0, 1, 1], [], []>} : vector<128x32xbf16>, vector<32x32xbf16>, vector<128x32xf32> -> vector<128x32xf32>
    %c0_16 = arith.constant 0 : index
    %c0_17 = arith.constant 0 : index
    %47 = vector.load %arg7[%c0_16, %c0_17] : memref<32x32xbf16, #tpu.memory_space<vmem>>, vector<32x32xbf16>
    %cst_18 = arith.constant dense<0.000000e+00> : vector<128x32xf32>
    %48 = tpu.matmul %42, %47, %cst_18 {dimension_numbers = #tpu.dot_dimension_numbers<[1], [0], [0], [1], [0, 0, 1, 1], [], []>} : vector<128x32xbf16>, vector<32x32xbf16>, vector<128x32xf32> -> vector<128x32xf32>
    %49 = arith.addf %46, %48 : vector<128x32xf32>
    %c0_19 = arith.constant 0 : index
    %c0_20 = arith.constant 0 : index
    %50 = vector.load %arg8[%c0_19, %c0_20] : memref<1x32xf32, #tpu.memory_space<vmem>>, vector<1x32xf32>
    %51 = vector.broadcast %50 : vector<1x32xf32> to vector<128x32xf32>
    %52 = arith.addf %49, %51 : vector<128x32xf32>
    %cst_21 = arith.constant 0.000000e+00 : f32
    %53 = vector.broadcast %cst_21 : f32 to vector<128x32xf32>
    %54 = arith.maximumf %52, %53 : vector<128x32xf32>
    %55 = vector.shape_cast %54 : vector<128x32xf32> to vector<8x16x32xf32>
    %cst_22 = arith.constant dense<0.000000e+00> : vector<8x32xf32>
    %56 = vector.multi_reduction <add>, %55, %cst_22 [1] : vector<8x16x32xf32> to vector<8x32xf32>
    %c0_23 = arith.constant 0 : index
    %c0_24 = arith.constant 0 : index
    %57 = vector.load %arg9[%c0_23, %c0_24] : memref<32x3xf32, #tpu.memory_space<vmem>>, vector<32x3xf32>
    %cst_25 = arith.constant dense<0.000000e+00> : vector<8x3xf32>
    %58 = tpu.matmul %56, %57, %cst_25 {dimension_numbers = #tpu.dot_dimension_numbers<[1], [0], [0], [1], [0, 0, 1, 1], [], []>} : vector<8x32xf32>, vector<32x3xf32>, vector<8x3xf32> -> vector<8x3xf32>
    %c0_26 = arith.constant 0 : index
    %c0_27 = arith.constant 0 : index
    %59 = vector.load %arg10[%c0_26, %c0_27] : memref<1x3xf32, #tpu.memory_space<vmem>>, vector<1x3xf32>
    %60 = vector.broadcast %59 : vector<1x3xf32> to vector<8x3xf32>
    %61 = arith.addf %58, %60 : vector<8x3xf32>
    %c0_28 = arith.constant 0 : index
    %c0_29 = arith.constant 0 : index
    %62 = vector.load %arg11[%c0_28, %c0_29] : memref<8x3xf32, #tpu.memory_space<vmem>>, vector<8x3xf32>
    tpu.vector_store %arg11[%c0_28, %c0_29], %61 {strides = array<i32>} : memref<8x3xf32, #tpu.memory_space<vmem>>, vector<8x3xf32>,
    return
  }
  func.func @transform_0(%arg0: i32) -> (i32, i32) {
    %c0_i32 = arith.constant 0 : i32
    %c0_i32_0 = arith.constant 0 : i32
    return %arg0, %c0_i32 : i32, i32
  }
  func.func @transform_1(%arg0: i32) -> (i32, i32) {
    %c0_i32 = arith.constant 0 : i32
    %c0_i32_0 = arith.constant 0 : i32
    return %arg0, %c0_i32 : i32, i32
  }
  func.func @transform_2(%arg0: i32) -> (i32, i32) {
    %c0_i32 = arith.constant 0 : i32
    %c0_i32_0 = arith.constant 0 : i32
    %c0_i32_1 = arith.constant 0 : i32
    return %c0_i32, %c0_i32_0 : i32, i32
  }
  func.func @transform_3(%arg0: i32) -> (i32, i32) {
    %c0_i32 = arith.constant 0 : i32
    %c0_i32_0 = arith.constant 0 : i32
    %c0_i32_1 = arith.constant 0 : i32
    return %c0_i32, %c0_i32_0 : i32, i32
  }
  func.func @transform_4(%arg0: i32) -> (i32, i32) {
    %c0_i32 = arith.constant 0 : i32
    %c0_i32_0 = arith.constant 0 : i32
    %c0_i32_1 = arith.constant 0 : i32
    return %c0_i32, %c0_i32_0 : i32, i32
  }
  func.func @transform_5(%arg0: i32) -> (i32, i32) {
    %c0_i32 = arith.constant 0 : i32
    %c0_i32_0 = arith.constant 0 : i32
    %c0_i32_1 = arith.constant 0 : i32
    return %c0_i32, %c0_i32_0 : i32, i32
  }
  func.func @transform_6(%arg0: i32) -> (i32, i32) {
    %c0_i32 = arith.constant 0 : i32
    %c0_i32_0 = arith.constant 0 : i32
    %c0_i32_1 = arith.constant 0 : i32
    return %c0_i32, %c0_i32_0 : i32, i32
  }
  func.func @transform_7(%arg0: i32) -> (i32, i32) {
    %c0_i32 = arith.constant 0 : i32
    %c0_i32_0 = arith.constant 0 : i32
    %c0_i32_1 = arith.constant 0 : i32
    return %c0_i32, %c0_i32_0 : i32, i32
  }
  func.func @transform_8(%arg0: i32) -> (i32, i32) {
    %c0_i32 = arith.constant 0 : i32
    %c0_i32_0 = arith.constant 0 : i32
    %c0_i32_1 = arith.constant 0 : i32
    return %c0_i32, %c0_i32_0 : i32, i32
  }
  func.func @transform_9(%arg0: i32) -> (i32, i32) {
    %c0_i32 = arith.constant 0 : i32
    %c0_i32_0 = arith.constant 0 : i32
    %c0_i32_1 = arith.constant 0 : i32
    return %c0_i32, %c0_i32_0 : i32, i32
  }
  func.func @transform_10(%arg0: i32) -> (i32, i32) {
    %c0_i32 = arith.constant 0 : i32
    %c0_i32_0 = arith.constant 0 : i32
    return %arg0, %c0_i32 : i32, i32
  }
}

</mosaic_0001>

<bundles_post_ra>
// kernel: tpu_custom_call.1
= control target key start
LH: loop header
LB: loop body
LE: loop exit
PB: predicated region body
PF: predicated region fallthrough
CT: control target
= control target key end

     0   :  { %s2174_s13 = smov 0   ;;  %s2693_s0 = inlined_call_operand.vmem [shape: s32[256,4], index: 0, kind: input, shape index: {}]   ;;  %s2694_s1 = inlined_call_operand.vmem [shape: bf16[256,32], index: 1, kind: input, shape index: {}]   ;;  %s2695_s2 = inlined_call_operand.vmem [shape: bf16[32,32], index: 2, kind: input, shape index: {}]   ;;  %s2696_s3 = inlined_call_operand.vmem [shape: bf16[32,32], index: 3, kind: input, shape index: {}]   ;;  %s2697_s4 = inlined_call_operand.vmem [shape: f32[1,32], index: 4, kind: input, shape index: {}]   ;;  %s2698_s5 = inlined_call_operand.vmem [shape: bf16[32,32], index: 5, kind: input, shape index: {}]   ;;  %s2699_s6 = inlined_call_operand.vmem [shape: bf16[32,32], index: 6, kind: input, shape index: {}]   ;;  %s2700_s7 = inlined_call_operand.vmem [shape: f32[1,32], index: 7, kind: input, shape index: {}]   ;;  %s2701_s8 = inlined_call_operand.vmem [shape: f32[32,3], index: 8, kind: input, shape index: {}]   ;;  %s2702_s9 = inlined_call_operand.vmem [shape: f32[1,3], index: 9, kind: input, shape index: {}]   ;;  %s2703_s10 = inlined_call_operand.vmem [shape: f32[16,3], index: 10, kind: output, shape index: {}]  }
   0x1 LB: > { %s2180_s14 = sadd.s32 4294967295, %s2112_s13   ;;  %p1843_p0 = scmp.ge.s32.totalorder %s2112_s13, 1  ;;  %s2112_s13 = sphi %s2174_s13, %s20_s13  }
   0x2   : > { %p324_p1 = scmp.lt.s32.totalorder %s2112_s13, 3 }
   0x4   : > { %p325_p2 = pnand %p1843_p0, %p324_p1 }
   0x5   : > { %s1844_s15 = sshll.u32 (!%p325_p2), %s2180_s14, 4  ;;  %p378_p4 = scmp.lt.s32.totalorder (!%p325_p2), %s2180_s14, 1 }
   0x6   : > { %328 = sbr.rel (%p325_p2) target bundleno = 1220 (0x4c4), region = 60  ;;  %p367_p3 = scmp.lt.s32.totalorder (!%p325_p2), %s1844_s15, 31 }
   0xb   : > { %v2114_v0 = vmov 1   ;;  %v2115_v1 = vmov 0   ;;  %v2116_v2 = vmov 2   ;;  %s2705_s15 = smov (!%p367_p3, %s1844_s15), 31  ;;  %v2117_v7 = vmov 3   ;;  %s2707_s14 = smov (!%p378_p4, %s2180_s14), 1 }
   0xc   : > { %2046 = vset.pattern.permute.xlu1 %v2114_v0  ;;  %2045 = vset.pattern.permute.xlu0 %v2115_v1  ;;  %s1845_s16 = sshll.u32 %s2705_s15, 3  ;;  %s1847_s20 = sshll.u32 %s2705_s15, 2  ;;  %v415_v30 = vlaneseq  ;;  %v2118_v36 = vmov 0.0  }
   0xd   : > { %2047 = vset.pattern.permute.xlu2 %v2116_v2  ;;  %s2194_s19 = scalar_lea.vmem %s2693_s0, %s1845_s16  ;;  %s2233_s23 = scalar_lea.vmem %s2694_s1, %s1847_s20 }
   0xe   : > { %v383_v3 = vld [vmem:[%s2194_s19] sm:$0xff]  ;;  %v384_v4 = vld [vmem:[%s2194_s19 + $0x8] sm:$0xff]  ;;  %v385_v6 = vld [vmem:[%s2194_s19 + $0x10] sm:$0xff]  ;;  %v2288_v33 = vand.u32 127, %v415_v30  ;;  %s1848_s16 = sshll.u32 %s2707_s14, 3 }
   0xf   : > { %530 = vperm.xlu1 %2046, %v383_v3   ;;  %418 = vperm.xlu0 %2045, %v383_v3   ;;  %v387_v5 = vld [vmem:[%s2194_s19 + $0x20] sm:$0xff]  ;;  %v386_v8 = vld [vmem:[%s2194_s19 + $0x18] sm:$0xff]  ;;  %v389_v9 = vld [vmem:[%s2194_s19 + $0x30] sm:$0xff]  ;;  %s381_s21 = scalar_lea.vmem %s2703_s10, %s1848_s16 }
  0x10   : > { %706 = vperm.xlu2 %2047, %v383_v3   ;;  %v390_v10 = vld [vmem:[%s2194_s19 + $0x38] sm:$0xff]  ;;  %v388_v11 = vld [vmem:[%s2194_s19 + $0x28] sm:$0xff]  ;;  %v391_v12 = vld [vmem:[%s2194_s19 + $0x40] sm:$0xff] }
  0x11   : > { %v2238_v14 = vld [vmem:[%s2233_s23 + $0x38] sm:$0xff]  ;;  %v2242_v15 = vld [vmem:[%s2233_s23 + $0x30] sm:$0xff]  ;;  %v392_v17 = vld [vmem:[%s2194_s19 + $0x48] sm:$0xff] }
  0x12   : > { %1097 = vmatpush.bf16.msra.mxu0 %v2238_v14  ;;  %v2249_v18 = vld [vmem:[%s2233_s23 + $0x28] sm:$0xff]  ;;  %v2255_v19 = vld [vmem:[%s2233_s23 + $0x20] sm:$0xff]  ;;  %v2259_v20 = vld [vmem:[%s2194_s19 + $0x58] sm:$0xff] }
  0x13   : > { %v2263_v23 = vld [vmem:[%s2233_s23 + $0x18] sm:$0xff]  ;;  %v2271_v25 = vld [vmem:[%s2233_s23 + $0x10] sm:$0xff]  ;;  %v2278_v29 = vld [vmem:[%s2233_s23 + $0x8] sm:$0xff] }
  0x14   : > { %v2275_v28 = vld [vmem:[%s2194_s19 + $0x50] sm:$0xff]  ;;  %v2286_v32 = vld [vmem:[%s2233_s23] sm:$0xff]  ;;  %v2310_v44 = vld [vmem:[%s2194_s19 + $0x68] sm:$0xff] }
  0x16   : > { %1098 = vmatpush.bf16.msra.mxu0 %v2242_v15 }
  0x17   : > { %533 = vperm.xlu1 %2046, %v384_v4   ;;  %421 = vperm.xlu0 %2045, %v384_v4  }
  0x18   : > { %709 = vperm.xlu2 %2047, %v384_v4  }
  0x1a   : > { %1099 = vmatpush.bf16.msra.mxu0 %v2249_v18 }
  0x1e   : > { %1100 = vmatpush.bf16.msra.mxu0 %v2255_v19 }
  0x1f   : > { %2048 = vset.pattern.permute.xlu1 %v2117_v7  ;;  %430 = vperm.xlu0 %2045, %v387_v5  }
  0x20   : > { %885 = vperm.xlu1 %2048, %v384_v4   ;;  %2049 = vset.pattern.permute.xlu2 %v2115_v1 }
  0x21   : > { %424 = vperm.xlu2 %2049, %v385_v6  }
  0x22   : > { %1101 = vmatpush.bf16.msra.mxu0 %v2263_v23 }
  0x26   : > { %1102 = vmatpush.bf16.msra.mxu0 %v2271_v25 }
  0x27   : > { %2056 = vset.pattern.permute.xlu0 %v2114_v0 }
  0x28   : > { %2050 = vset.pattern.permute.xlu1 %v2115_v1  ;;  %539 = vperm.xlu0 %2056, %v386_v8  }
  0x29   : > { %427 = vperm.xlu1 %2050, %v386_v8   ;;  %2051 = vset.pattern.permute.xlu2 %v2114_v0 }
  0x2a   : > { %536 = vperm.xlu2 %2051, %v385_v6   ;;  %1103 = vmatpush.bf16.msra.mxu0 %v2278_v29 }
  0x2e   : > { %1104 = vmatpush.bf16.msra.mxu0 %v2286_v32 }
  0x30   : > { %548 = vperm.xlu0 %2056, %v389_v9  }
  0x31   : > { %2052 = vset.pattern.permute.xlu1 %v2116_v2 }
  0x32   : > { %712 = vperm.xlu1 %2052, %v385_v6   ;;  %2053 = vset.pattern.permute.xlu2 %v2116_v2 }
  0x33   : > { %715 = vperm.xlu2 %2053, %v386_v8  }
  0x38   : > { %2065 = vset.pattern.permute.xlu0 %v2117_v7 }
  0x39   : > { %882 = vperm.xlu0 %2065, %v383_v3  }
  0x3a   : > { %2054 = vset.pattern.permute.xlu1 %v2117_v7 }
  0x3b   : > { %888 = vperm.xlu1 %2054, %v385_v6   ;;  %2055 = vset.pattern.permute.xlu2 %v2117_v7 }
  0x3c   : > { %891 = vperm.xlu2 %2055, %v386_v8  }
  0x41   : > { %903 = vperm.xlu0 %2065, %v390_v10  }
  0x43   : > { %2057 = vset.pattern.permute.xlu1 %v2115_v1 }
  0x44   : > { %433 = vperm.xlu1 %2057, %v388_v11   ;;  %2058 = vset.pattern.permute.xlu2 %v2114_v0 }
  0x45   : > { %542 = vperm.xlu2 %2058, %v387_v5  }
  0x49   : > { %2070 = vset.pattern.permute.xlu0 %v2116_v2 }
  0x4a   : > { %721 = vperm.xlu0 %2070, %v388_v11  }
  0x4c   : > { %2059 = vset.pattern.permute.xlu1 %v2114_v0 }
  0x4d   : > { %545 = vperm.xlu1 %2059, %v388_v11   ;;  %2060 = vset.pattern.permute.xlu2 %v2116_v2 }
  0x4e   : > { %718 = vperm.xlu2 %2060, %v387_v5  }
  0x52   : > { %730 = vperm.xlu0 %2070, %v391_v12  }
  0x55   : > { %2061 = vset.pattern.permute.xlu1 %v2117_v7 }
  0x56   : > { %894 = vperm.xlu1 %2061, %v387_v5   ;;  %2062 = vset.pattern.permute.xlu2 %v2117_v7 }
  0x57   : > { %897 = vperm.xlu2 %2062, %v388_v11  }
  0x5a   : > { %2079 = vset.pattern.permute.xlu0 %v2115_v1 }
  0x5b   : > { %451 = vperm.xlu0 %2079, %v2259_v20  }
  0x5e   : > { %2063 = vset.pattern.permute.xlu1 %v2115_v1 }
  0x5f   : > { %436 = vperm.xlu1 %2063, %v389_v9   ;;  %2064 = vset.pattern.permute.xlu2 %v2115_v1 }
  0x60   : > { %439 = vperm.xlu2 %2064, %v390_v10  }
  0x63   : > { %2084 = vset.pattern.permute.xlu0 %v2117_v7 }
  0x64   : > { %912 = vperm.xlu0 %2084, %v2275_v28  }
  0x67   : > { %2066 = vset.pattern.permute.xlu1 %v2114_v0 }
  0x68   : > { %551 = vperm.xlu1 %2066, %v390_v10   ;;  %2067 = vset.pattern.permute.xlu2 %v2116_v2 }
  0x69   : > { %724 = vperm.xlu2 %2067, %v389_v9  }
  0x6a   : > { %v2228_v13 = vpop.permute.xlu2 %706 }
  0x6b   : > { %vm753_vm5 = vcmp.eq.s32.totalorder %v2288_v33, %v2228_v13 }
  0x6c   : > { %2089 = vset.pattern.permute.xlu0 %v2114_v0  ;;  %v1881_v55 = vsel %vm753_vm5, 1.0, %v2118_v36 }
  0x6d   : > { %569 = vperm.xlu0 %2089, %v2310_v44  }
  0x70   : > { %2068 = vset.pattern.permute.xlu1 %v2116_v2 }
  0x71   : > { %727 = vperm.xlu1 %2068, %v390_v10   ;;  %2069 = vset.pattern.permute.xlu2 %v2117_v7 }
  0x72   : > { %900 = vperm.xlu2 %2069, %v389_v9   ;;  %v2245_v16 = vpop.permute.xlu2 %709 }
  0x73   : > { %vm754_vm4 = vcmp.eq.s32.totalorder %v2288_v33, %v2245_v16 }
  0x74   : > { %v1882_v52 = vsel %vm754_vm4, 1.0, %v2118_v36 }
  0x75   : > { %2094 = vset.pattern.permute.xlu0 %v2115_v1 }
  0x79   : > { %2071 = vset.pattern.permute.xlu1 %v2115_v1 }
  0x7a   : > { %442 = vperm.xlu1 %2071, %v391_v12   ;;  %2072 = vset.pattern.permute.xlu2 %v2115_v1 }
  0x7b   : > { %445 = vperm.xlu2 %2072, %v392_v17   ;;  %v2266_v24 = vpop.permute.xlu2 %424 }
  0x7c   : > { %vm467_vm8 = vcmp.eq.s32.totalorder %v2288_v33, %v2266_v24  ;;  %v2350_v24 = vld [vmem:[%s2194_s19 + $0x60] sm:$0xff] }
  0x7d   : > { %v1851_v58 = vsel %vm467_vm8, 1.0, %v2118_v36 }
  0x81   : > { %v531_v21 = vpop.permute.xlu1 %530  ;;  %v419_v22 = vpop.permute.xlu0 %418 }
  0x82   : > { %2073 = vset.pattern.permute.xlu1 %v2114_v0  ;;  %vm577_vm2 = vcmp.eq.s32.totalorder %v2288_v33, %v531_v21  ;;  %vm465_vm3 = vcmp.eq.s32.totalorder %v2288_v33, %v419_v22 }
  0x83   : > { %554 = vperm.xlu1 %2073, %v391_v12   ;;  %2074 = vset.pattern.permute.xlu2 %v2114_v0  ;;  %v1865_v40 = vsel %vm577_vm2, 1.0, %v2118_v36  ;;  %v1849_v41 = vsel %vm465_vm3, 1.0, %v2118_v36 }
  0x84   : > { %557 = vperm.xlu2 %2074, %v392_v17   ;;  %v537_v31 = vpop.permute.xlu2 %536  ;;  %v673_v43 = vadd.f32 %v1865_v40, %v1849_v41 }
  0x85   : > { %vm579_vm9 = vcmp.eq.s32.totalorder %v2288_v33, %v537_v31 }
  0x86   : > { %v689_v48 = vpack.c.bf16 %v673_v43, %v673_v43  ;;  %v1867_v59 = vsel %vm579_vm9, 1.0, %v2118_v36  ;;  %v2370_v43 = vld [vmem:[%s2194_s19 + $0x70] sm:$0xff] }
  0x87   : > { %v675_v4 = vadd.f32 %v1867_v59, %v1851_v58  ;;  %460 = vperm.xlu0 %2094, %v2370_v43  }
  0x88   : > { %v817_v51 = vunpack.c.l.bf16 %v689_v48 }
  0x89   : > { %v534_v26 = vpop.permute.xlu1 %533  ;;  %v422_v27 = vpop.permute.xlu0 %421  ;;  %v691_v9 = vpack.c.bf16 %v675_v4, %v675_v4 }
  0x8a   : > { %vm578_vm0 = vcmp.eq.s32.totalorder %v2288_v33, %v534_v26  ;;  %vm466_vm1 = vcmp.eq.s32.totalorder %v2288_v33, %v422_v27  ;;  %v849_v61 = vadd.f32 %v1881_v55, %v817_v51 }
  0x8b   : > { %2075 = vset.pattern.permute.xlu1 %v2116_v2  ;;  %v1866_v37 = vsel %vm578_vm0, 1.0, %v2118_v36  ;;  %v1850_v38 = vsel %vm466_vm1, 1.0, %v2118_v36 }
  0x8c   : > { %733 = vperm.xlu1 %2075, %v392_v17   ;;  %2076 = vset.pattern.permute.xlu2 %v2117_v7  ;;  %v674_v42 = vadd.f32 %v1866_v37, %v1850_v38  ;;  %v865_v5 = vpack.c.bf16 %v849_v61, %v849_v61 }
  0x8d   : > { %906 = vperm.xlu2 %2076, %v391_v12   ;;  %v2303_v39 = vpop.permute.xlu2 %715 }
  0x8e   : > { %v690_v45 = vpack.c.bf16 %v674_v42, %v674_v42  ;;  %vm756_vm11 = vcmp.eq.s32.totalorder %v2288_v33, %v2303_v39  ;;  %v993_v11 = vunpack.c.l.bf16 %v865_v5 }
  0x8f   : > { %v1884_v26 = vsel %vm756_vm11, 1.0, %v2118_v36  ;;  %2099 = vset.pattern.permute.xlu0 %v2116_v2 }
  0x90   : > { %v818_v49 = vunpack.c.l.bf16 %v690_v45 }
  0x91   : > { %v2292_v34 = vpop.permute.xlu0 %430 }
  0x92   : > { %v2297_v35 = vpop.permute.xlu1 %885  ;;  %v850_v53 = vadd.f32 %v1882_v52, %v818_v49  ;;  %vm469_vm14 = vcmp.eq.s32.totalorder %v2288_v33, %v2292_v34 }
  0x93   : > { %vm930_vm10 = vcmp.eq.s32.totalorder %v2288_v33, %v2297_v35  ;;  %v1853_v38 = vsel %vm469_vm14, 1.0, %v2118_v36 }
  0x94   : > { %2077 = vset.pattern.permute.xlu1 %v2117_v7  ;;  %v866_v62 = vpack.c.bf16 %v850_v53, %v850_v53  ;;  %v1898_v12 = vsel %vm930_vm10, 1.0, %v2118_v36 }
  0x95   : > { %909 = vperm.xlu1 %2077, %v392_v17   ;;  %2078 = vset.pattern.permute.xlu2 %v2115_v1 }
  0x96   : > { %448 = vperm.xlu2 %2078, %v2275_v28   ;;  %v2317_v50 = vpop.permute.xlu2 %891  ;;  %v994_v6 = vunpack.c.l.bf16 %v866_v62 }
  0x97   : > { %vm932_vm1 = vcmp.eq.s32.totalorder %v2288_v33, %v2317_v50 }
  0x98   : > { %v1026_v17 = vadd.f32 %v1898_v12, %v994_v6  ;;  %v1900_v49 = vsel %vm932_vm1, 1.0, %v2118_v36 }
  0x9a   : > { %v540_v46 = vpop.permute.xlu0 %539 }
  0x9b   : > { %v428_v47 = vpop.permute.xlu1 %427  ;;  %vm580_vm7 = vcmp.eq.s32.totalorder %v2288_v33, %v540_v46 }
  0x9c   : > { %vm468_vm6 = vcmp.eq.s32.totalorder %v2288_v33, %v428_v47  ;;  %v1868_v57 = vsel %vm580_vm7, 1.0, %v2118_v36 }
  0x9d   : > { %2080 = vset.pattern.permute.xlu1 %v2114_v0  ;;  %v1852_v56 = vsel %vm468_vm6, 1.0, %v2118_v36 }
  0x9e   : > { %560 = vperm.xlu1 %2080, %v2275_v28   ;;  %2081 = vset.pattern.permute.xlu2 %v2114_v0  ;;  %v676_v63 = vadd.f32 %v1868_v57, %v1852_v56  ;;  %v2384_v56 = vld [vmem:[%s2194_s19 + $0x78] sm:$0xff] }
  0x9f   : > { %563 = vperm.xlu2 %2081, %v2259_v20   ;;  %v543_v3 = vpop.permute.xlu2 %542  ;;  %751 = vperm.xlu0 %2099, %v2384_v56  }
  0xa0   : > { %v692_v8 = vpack.c.bf16 %v676_v63, %v676_v63  ;;  %vm581_vm15 = vcmp.eq.s32.totalorder %v2288_v33, %v543_v3 }
  0xa2   : > { %v2330_v54 = vpop.permute.xlu0 %548  ;;  %v820_v21 = vunpack.c.l.bf16 %v692_v8 }
  0xa3   : > { %vm583_vm8 = vcmp.eq.s32.totalorder %v2288_v33, %v2330_v54 }
  0xa4   : > { %v713_v60 = vpop.permute.xlu1 %712  ;;  %v852_v35 = vadd.f32 %v1884_v26, %v820_v21 }
  0xa5   : > { %vm755_vm12 = vcmp.eq.s32.totalorder %v2288_v33, %v713_v60 }
  0xa6   : > { %2082 = vset.pattern.permute.xlu1 %v2116_v2  ;;  %v1883_v27 = vsel %vm755_vm12, 1.0, %v2118_v36  ;;  %v868_v40 = vpack.c.bf16 %v852_v35, %v852_v35 }
  0xa7   : > { %736 = vperm.xlu1 %2082, %v2275_v28   ;;  %2083 = vset.pattern.permute.xlu2 %v2116_v2  ;;  %v819_v28 = vunpack.c.l.bf16 %v691_v9 }
  0xa8   : > { %739 = vperm.xlu2 %2083, %v2259_v20   ;;  %v719_v31 = vpop.permute.xlu2 %718  ;;  %v996_v46 = vunpack.c.l.bf16 %v868_v40  ;;  %2102 = vset.pattern.permute.xlu0 %v2117_v7 }
  0xa9   : > { %v851_v37 = vadd.f32 %v1883_v27, %v819_v28  ;;  %vm757_vm3 = vcmp.eq.s32.totalorder %v2288_v33, %v719_v31  ;;  %v1871_v28 = vsel %vm583_vm8, 1.0, %v2118_v36 }
  0xaa   : > { %v1028_v50 = vadd.f32 %v1900_v49, %v996_v46  ;;  %v1885_v60 = vsel %vm757_vm3, 1.0, %v2118_v36 }
  0xab   : > { %v883_v10 = vpop.permute.xlu0 %882  ;;  %v867_v41 = vpack.c.bf16 %v851_v37, %v851_v37 }
  0xac   : > { %vm929_vm13 = vcmp.eq.s32.totalorder %v2288_v33, %v883_v10 }
  0xad   : > { %v1897_v13 = vsel %vm929_vm13, 1.0, %v2118_v36  ;;  %v889_v16 = vpop.permute.xlu1 %888  ;;  %v995_v47 = vunpack.c.l.bf16 %v867_v41 }
  0xae   : > { %v1025_v22 = vadd.f32 %v1897_v13, %v993_v11  ;;  %vm931_vm0 = vcmp.eq.s32.totalorder %v2288_v33, %v889_v16 }
  0xaf   : > { %2085 = vset.pattern.permute.xlu1 %v2117_v7  ;;  %v1899_v45 = vsel %vm931_vm0, 1.0, %v2118_v36 }
  0xb0   : > { %915 = vperm.xlu1 %2085, %v2259_v20   ;;  %v2356_v30 = vpack.c.bf16 %v1026_v17, %v1025_v22  ;;  %2086 = vset.pattern.permute.xlu2 %v2115_v1  ;;  %v1869_v20 = vsel %vm581_vm15, 1.0, %v2118_v36  ;;  %v1027_v51 = vadd.f32 %v1899_v45, %v995_v47 }
  0xb1   : > { %454 = vperm.xlu2 %2086, %v2350_v24   ;;  %v677_v34 = vadd.f32 %v1869_v20, %v1853_v38  ;;  %v898_v48 = vpop.permute.xlu2 %897 }
  0xb2   : > { %1105 = vmatmul.bf16.vlgmr.msra.gmra.mxu0 %v2356_v30  ;;  %v2388_v58 = vpack.c.bf16 %v1028_v50, %v1027_v51  ;;  %vm934_vm6 = vcmp.eq.s32.totalorder %v2288_v33, %v898_v48 }
  0xb3   : > { %v2366_v39 = vpop.permute.xlu0 %903  ;;  %v693_v52 = vpack.c.bf16 %v677_v34, %v677_v34  ;;  %v1902_v12 = vsel %vm934_vm6, 1.0, %v2118_v36 }
  0xb4   : > { %vm936_vm14 = vcmp.eq.s32.totalorder %v2288_v33, %v2366_v39 }
  0xb5   : > { %v821_v57 = vunpack.c.l.bf16 %v693_v52  ;;  %v1904_v52 = vsel %vm936_vm14, 1.0, %v2118_v36 }
  0xb6   : > { %v434_v42 = vpop.permute.xlu1 %433 }
  0xb7   : > { %vm470_vm2 = vcmp.eq.s32.totalorder %v2288_v33, %v434_v42  ;;  %v853_v63 = vadd.f32 %v1885_v60, %v821_v57 }
  0xb8   : > { %2087 = vset.pattern.permute.xlu1 %v2115_v1  ;;  %v1854_v59 = vsel %vm470_vm2, 1.0, %v2118_v36 }
  0xb9   : > { %457 = vperm.xlu1 %2087, %v2310_v44   ;;  %2088 = vset.pattern.permute.xlu2 %v2114_v0  ;;  %v869_v8 = vpack.c.bf16 %v853_v63, %v853_v63 }
  0xba   : > { %566 = vperm.xlu2 %2088, %v2350_v24   ;;  %v440_v4 = vpop.permute.xlu2 %439 }
  0xbb   : > { %v997_v16 = vunpack.c.l.bf16 %v869_v8  ;;  %vm472_vm10 = vcmp.eq.s32.totalorder %v2288_v33, %v440_v4 }
  0xbc   : > { %v722_v55 = vpop.permute.xlu0 %721  ;;  %v1856_v38 = vsel %vm472_vm10, 1.0, %v2118_v36 }
  0xbd   : > { %vm758_vm5 = vcmp.eq.s32.totalorder %v2288_v33, %v722_v55 }
  0xbe   : > { %v1886_v5 = vsel %vm758_vm5, 1.0, %v2118_v36 }
  0xbf   : > { %v546_v53 = vpop.permute.xlu1 %545 }
  0xc0   : > { %vm582_vm4 = vcmp.eq.s32.totalorder %v2288_v33, %v546_v53 }
  0xc1   : > { %v1870_v61 = vsel %vm582_vm4, 1.0, %v2118_v36  ;;  %2090 = vset.pattern.permute.xlu1 %v2116_v2 }
  0xc2   : > { %v678_v62 = vadd.f32 %v1870_v61, %v1854_v59  ;;  %742 = vperm.xlu1 %2090, %v2350_v24   ;;  %1110 = vmatmul.bf16.gmra.mxu0 %v2388_v58 }
  0xc3   : > { %2091 = vset.pattern.permute.xlu2 %v2116_v2  ;;  %v725_v26 = vpop.permute.xlu2 %724 }
  0xc4   : > { %v694_v3 = vpack.c.bf16 %v678_v62, %v678_v62  ;;  %745 = vperm.xlu2 %2091, %v2310_v44   ;;  %vm759_vm11 = vcmp.eq.s32.totalorder %v2288_v33, %v725_v26  ;;  %v731_v62 = vpop.permute.xlu0 %730 }
  0xc5   : > { %v1887_v40 = vsel %vm759_vm11, 1.0, %v2118_v36  ;;  %vm761_vm4 = vcmp.eq.s32.totalorder %v2288_v33, %v731_v62 }
  0xc6   : > { %v822_v6 = vunpack.c.l.bf16 %v694_v3 }
  0xc8   : > { %v854_v9 = vadd.f32 %v1886_v5, %v822_v6  ;;  %v895_v10 = vpop.permute.xlu1 %894 }
  0xc9   : > { %vm933_vm7 = vcmp.eq.s32.totalorder %v2288_v33, %v895_v10 }
  0xca   : > { %v870_v11 = vpack.c.bf16 %v854_v9, %v854_v9  ;;  %2092 = vset.pattern.permute.xlu1 %v2117_v7  ;;  %v1901_v13 = vsel %vm933_vm7, 1.0, %v2118_v36  ;;  %v1889_v9 = vsel %vm761_vm4, 1.0, %v2118_v36 }
  0xcb   : > { %918 = vperm.xlu1 %2092, %v2350_v24   ;;  %v1029_v21 = vadd.f32 %v1901_v13, %v997_v16 }
  0xcc   : > { %v998_v17 = vunpack.c.l.bf16 %v870_v11  ;;  %2093 = vset.pattern.permute.xlu2 %v2117_v7  ;;  %v901_v35 = vpop.permute.xlu2 %900 }
  0xcd   : > { %921 = vperm.xlu2 %2093, %v2310_v44   ;;  %vm935_vm15 = vcmp.eq.s32.totalorder %v2288_v33, %v901_v35 }
  0xce   : > { %v1030_v22 = vadd.f32 %v1902_v12, %v998_v17  ;;  %v1903_v50 = vsel %vm935_vm15, 1.0, %v2118_v36 }
  0xd0   : > { %v2412_v27 = vpack.c.bf16 %v1030_v22, %v1029_v21 }
  0xd1   : > { %v437_v31 = vpop.permute.xlu1 %436 }
  0xd2   : > { %vm471_vm9 = vcmp.eq.s32.totalorder %v2288_v33, %v437_v31  ;;  %1115 = vmatmul.bf16.gmra.mxu0 %v2412_v27 }
  0xd3   : > { %v1855_v24 = vsel %vm471_vm9, 1.0, %v2118_v36  ;;  %2095 = vset.pattern.permute.xlu1 %v2115_v1 }
  0xd4   : > { %v679_v44 = vadd.f32 %v1871_v28, %v1855_v24  ;;  %463 = vperm.xlu1 %2095, %v2384_v56   ;;  %v452_v24 = vpop.permute.xlu0 %451 }
  0xd5   : > { %2096 = vset.pattern.permute.xlu2 %v2114_v0  ;;  %v446_v45 = vpop.permute.xlu2 %445  ;;  %vm476_vm9 = vcmp.eq.s32.totalorder %v2288_v33, %v452_v24 }
  0xd6   : > { %572 = vperm.xlu2 %2096, %v2370_v43   ;;  %v695_v54 = vpack.c.bf16 %v679_v44, %v679_v44  ;;  %vm474_vm0 = vcmp.eq.s32.totalorder %v2288_v33, %v446_v45 }
  0xd8   : > { %v823_v20 = vunpack.c.l.bf16 %v695_v54 }
  0xda   : > { %v552_v37 = vpop.permute.xlu1 %551  ;;  %v855_v42 = vadd.f32 %v1887_v40, %v823_v20 }
  0xdb   : > { %vm584_vm12 = vcmp.eq.s32.totalorder %v2288_v33, %v552_v37 }
  0xdc   : > { %v1872_v1 = vsel %vm584_vm12, 1.0, %v2118_v36  ;;  %2097 = vset.pattern.permute.xlu1 %v2114_v0  ;;  %v871_v47 = vpack.c.bf16 %v855_v42, %v855_v42 }
  0xdd   : > { %v680_v41 = vadd.f32 %v1872_v1, %v1856_v38  ;;  %575 = vperm.xlu1 %2097, %v2384_v56  }
  0xde   : > { %2098 = vset.pattern.permute.xlu2 %v2116_v2  ;;  %v999_v2 = vunpack.c.l.bf16 %v871_v47  ;;  %v558_v55 = vpop.permute.xlu2 %557 }
  0xdf   : > { %748 = vperm.xlu2 %2098, %v2370_v43   ;;  %v696_v34 = vpack.c.bf16 %v680_v41, %v680_v41  ;;  %vm586_vm1 = vcmp.eq.s32.totalorder %v2288_v33, %v558_v55  ;;  %v1860_v41 = vsel %vm476_vm9, 1.0, %v2118_v36 }
  0xe0   : > { %v1031_v57 = vadd.f32 %v1903_v50, %v999_v2 }
  0xe1   : > { %v824_v48 = vunpack.c.l.bf16 %v696_v34 }
  0xe3   : > { %v728_v46 = vpop.permute.xlu1 %727 }
  0xe4   : > { %vm760_vm13 = vcmp.eq.s32.totalorder %v2288_v33, %v728_v46 }
  0xe5   : > { %v1888_v49 = vsel %vm760_vm13, 1.0, %v2118_v36  ;;  %2100 = vset.pattern.permute.xlu1 %v2117_v7 }
  0xe6   : > { %v856_v0 = vadd.f32 %v1888_v49, %v824_v48  ;;  %924 = vperm.xlu1 %2100, %v2370_v43   ;;  %v1858_v43 = vsel %vm474_vm0, 1.0, %v2118_v36 }
  0xe7   : > { %2101 = vset.pattern.permute.xlu2 %v2117_v7  ;;  %v907_v7 = vpop.permute.xlu2 %906 }
  0xe8   : > { %v872_v51 = vpack.c.bf16 %v856_v0, %v856_v0  ;;  %927 = vperm.xlu2 %2101, %v2384_v56   ;;  %v1874_v56 = vsel %vm586_vm1, 1.0, %v2118_v36  ;;  %vm937_vm6 = vcmp.eq.s32.totalorder %v2288_v33, %v907_v7 }
  0xe9   : > { %v682_v3 = vadd.f32 %v1874_v56, %v1858_v43  ;;  %v1905_v44 = vsel %vm937_vm6, 1.0, %v2118_v36 }
  0xea   : > { %v1000_v53 = vunpack.c.l.bf16 %v872_v51 }
  0xeb   : > { %v698_v8 = vpack.c.bf16 %v682_v3, %v682_v3 }
  0xec   : > { %v443_v59 = vpop.permute.xlu1 %442  ;;  %v1032_v39 = vadd.f32 %v1904_v52, %v1000_v53 }
  0xed   : > { %vm473_vm2 = vcmp.eq.s32.totalorder %v2288_v33, %v443_v59  ;;  %v826_v16 = vunpack.c.l.bf16 %v698_v8 }
  0xee   : > { %v2443_v60 = vpack.c.bf16 %v1032_v39, %v1031_v57  ;;  %v1857_v63 = vsel %vm473_vm2, 1.0, %v2118_v36  ;;  %v913_v39 = vpop.permute.xlu0 %912 }
  0xef   : > { %vm939_vm14 = vcmp.eq.s32.totalorder %v2288_v33, %v913_v39 }
  0xf0   : > { %1120 = vmatmul.bf16.gmra.mxu0 %v2443_v60  ;;  %v449_v11 = vpop.permute.xlu2 %448 }
  0xf1   : > { %vm475_vm10 = vcmp.eq.s32.totalorder %v2288_v33, %v449_v11  ;;  %v2022_v11 = vld [vmem:[%s2696_s3] sm:$0xff] }
  0xf2   : > { %v1859_v46 = vsel %vm475_vm10, 1.0, %v2118_v36 }
  0xf5   : > { %v555_v61 = vpop.permute.xlu1 %554 }
  0xf6   : > { %vm585_vm3 = vcmp.eq.s32.totalorder %v2288_v33, %v555_v61  ;;  %v1907_v61 = vsel %vm939_vm14, 1.0, %v2118_v36  ;;  %v570_v8 = vpop.permute.xlu0 %569 }
  0xf7   : > { %v1873_v4 = vsel %vm585_vm3, 1.0, %v2118_v36  ;;  %vm590_vm2 = vcmp.eq.s32.totalorder %v2288_v33, %v570_v8  ;;  %vm1174_vm3 = vcmask 261120  }
  0xf8   : > { %v681_v5 = vadd.f32 %v1873_v4, %v1857_v63 }
  0xf9   : > { %v564_v31 = vpop.permute.xlu2 %563 }
  0xfa   : > { %v697_v6 = vpack.c.bf16 %v681_v5, %v681_v5  ;;  %vm588_vm8 = vcmp.eq.s32.totalorder %v2288_v33, %v564_v31 }
  0xfb   : > { %v1876_v1 = vsel %vm588_vm8, 1.0, %v2118_v36 }
  0xfc   : > { %v825_v10 = vunpack.c.l.bf16 %v697_v6  ;;  %v684_v42 = vadd.f32 %v1876_v1, %v1860_v41 }
  0xfe   : > { %v857_v12 = vadd.f32 %v1889_v9, %v825_v10  ;;  %v734_v13 = vpop.permute.xlu1 %733  ;;  %v700_v49 = vpack.c.bf16 %v684_v42, %v684_v42  ;;  %v2023_v9 = vld [vmem:[%s2696_s3 + $0x8] sm:$0xff] }
  0xff   : > { %vm762_vm5 = vcmp.eq.s32.totalorder %v2288_v33, %v734_v13  ;;  %1205 = vmatpush.bf16.msra.mxu1 %v2023_v9  ;;  %2028 = vmatpush.bf16.msra.mxu3 %v2023_v9 }
 0x100   : > { %v1890_v17 = vsel %vm762_vm5, 1.0, %v2118_v36  ;;  %v873_v22 = vpack.c.bf16 %v857_v12, %v857_v12  ;;  %v828_v2 = vunpack.c.l.bf16 %v700_v49 }
 0x101   : > { %v858_v21 = vadd.f32 %v1890_v17, %v826_v16  ;;  %v1878_v17 = vsel %vm590_vm2, 1.0, %v2118_v36  ;;  %vm1738_vm2 = vcmask 1042434  }
 0x102   : > { %v1001_v28 = vunpack.c.l.bf16 %v873_v22  ;;  %v740_v45 = vpop.permute.xlu2 %739 }
 0x103   : > { %v874_v26 = vpack.c.bf16 %v858_v21, %v858_v21  ;;  %vm764_vm12 = vcmp.eq.s32.totalorder %v2288_v33, %v740_v45  ;;  %1206 = vmatpush.bf16.msra.mxu1 %v2022_v11  ;;  %2029 = vmatpush.bf16.msra.mxu3 %v2022_v11 }
 0x104   : > { %v1033_v38 = vadd.f32 %v1905_v44, %v1001_v28  ;;  %v1892_v51 = vsel %vm764_vm12, 1.0, %v2118_v36 }
 0x105   : > { %v1002_v35 = vunpack.c.l.bf16 %v874_v26  ;;  %v860_v55 = vadd.f32 %v1892_v51, %v828_v2 }
 0x106   : > { %1953 = vmatmul.msk.bf16.vlgmr.msra.gmra.mxu1 %vm1174_vm3, %v2286_v32  ;;  %1958 = vmatmul.msk.bf16.vlgmr.msra.gmra.mxu3 %vm1174_vm3, %v2249_v18 }
 0x107   : > { %v910_v54 = vpop.permute.xlu1 %909  ;;  %v876_v43 = vpack.c.bf16 %v860_v55, %v860_v55 }
 0x108   : > { %vm938_vm7 = vcmp.eq.s32.totalorder %v2288_v33, %v910_v54 }
 0x109   : > { %v1906_v37 = vsel %vm938_vm7, 1.0, %v2118_v36  ;;  %v1004_v63 = vunpack.c.l.bf16 %v876_v43  ;;  %v2020_v43 = vld [vmem:[%s2695_s2] sm:$0xff] }
 0x10a   : > { %v1034_v20 = vadd.f32 %v1906_v37, %v1002_v35 }
 0x10b   : > { %v455_v53 = vpop.permute.xlu2 %454 }
 0x10c   : > { %v2465_v40 = vpack.c.bf16 %v1034_v20, %v1033_v38  ;;  %vm477_vm0 = vcmp.eq.s32.totalorder %v2288_v33, %v455_v53  ;;  %v2021_v53 = vld [vmem:[%s2695_s2 + $0x8] sm:$0xff] }
 0x10d   : > { %v1861_v12 = vsel %vm477_vm0, 1.0, %v2118_v36  ;;  %2030 = vmatpush.bf16.msra.mxu2 %v2021_v53  ;;  %1290 = vmatpush.bf16.msrb.mxu0 %v2021_v53 }
 0x10e   : > { %1125 = vmatmul.bf16.gmra.mxu0 %v2465_v40 }
 0x110   : > { %v561_v34 = vpop.permute.xlu1 %560 }
 0x111   : > { %vm587_vm11 = vcmp.eq.s32.totalorder %v2288_v33, %v561_v34  ;;  %1291 = vmatpush.bf16.msrb.mxu0 %v2020_v43  ;;  %2031 = vmatpush.bf16.msra.mxu2 %v2020_v43 }
 0x112   : > { %v1875_v47 = vsel %vm587_vm11, 1.0, %v2118_v36 }
 0x113   : > { %v683_v48 = vadd.f32 %v1875_v47, %v1859_v46 }
 0x114   : > { %v567_v4 = vpop.permute.xlu2 %566 }
 0x115   : > { %v699_v0 = vpack.c.bf16 %v683_v48, %v683_v48  ;;  %vm589_vm1 = vcmp.eq.s32.totalorder %v2288_v33, %v567_v4 }
 0x116   : > { %v1877_v13 = vsel %vm589_vm1, 1.0, %v2118_v36  ;;  %1954 = vmatmul.msk.bf16.gmra.mxu1 %vm1174_vm3, %v2278_v29  ;;  %1959 = vmatmul.msk.bf16.gmra.mxu3 %vm1174_vm3, %v2242_v15  ;;  %vm1736_vm1 = vcmask 1041409  }
 0x117   : > { %v827_v50 = vunpack.c.l.bf16 %v699_v0  ;;  %v685_v21 = vadd.f32 %v1877_v13, %v1861_v12  ;;  %v461_v0 = vpop.permute.xlu0 %460 }
 0x118   : > { %vm479_vm10 = vcmp.eq.s32.totalorder %v2288_v33, %v461_v0 }
 0x119   : > { %v737_v52 = vpop.permute.xlu1 %736  ;;  %v701_v24 = vpack.c.bf16 %v685_v21, %v685_v21  ;;  %v1863_v29 = vsel %vm479_vm10, 1.0, %v2118_v36 }
 0x11a   : > { %vm763_vm13 = vcmp.eq.s32.totalorder %v2288_v33, %v737_v52 }
 0x11b   : > { %v1891_v57 = vsel %vm763_vm13, 1.0, %v2118_v36  ;;  %v829_v20 = vunpack.c.l.bf16 %v701_v24 }
 0x11c   : > { %v859_v59 = vadd.f32 %v1891_v57, %v827_v50 }
 0x11e   : > { %v875_v7 = vpack.c.bf16 %v859_v59, %v859_v59  ;;  %v746_v26 = vpop.permute.xlu2 %745 }
 0x11f   : > { %vm766_vm5 = vcmp.eq.s32.totalorder %v2288_v33, %v746_v26 }
 0x120   : > { %v1003_v56 = vunpack.c.l.bf16 %v875_v7  ;;  %v1894_v44 = vsel %vm766_vm5, 1.0, %v2118_v36  ;;  %vm1742_vm5 = vcmask 1044484  }
 0x122   : > { %v916_v62 = vpop.permute.xlu1 %915  ;;  %v1035_v5 = vadd.f32 %v1907_v61, %v1003_v56  ;;  %v752_v61 = vpop.permute.xlu0 %751 }
 0x123   : > { %vm940_vm15 = vcmp.eq.s32.totalorder %v2288_v33, %v916_v62  ;;  %vm768_vm14 = vcmp.eq.s32.totalorder %v2288_v33, %v752_v61 }
 0x124   : > { %v1908_v3 = vsel %vm940_vm15, 1.0, %v2118_v36 }
 0x125   : > { %v1036_v6 = vadd.f32 %v1908_v3, %v1004_v63 }
 0x126   : > { %1955 = vmatmul.msk.bf16.gmra.mxu1 %vm1174_vm3, %v2271_v25  ;;  %1960 = vmatmul.msk.bf16.gmra.mxu3 %vm1174_vm3, %v2238_v14  ;;  %v1896_v14 = vsel %vm768_vm14, 1.0, %v2118_v36 }
 0x127   : > { %v2486_v10 = vpack.c.bf16 %v1036_v6, %v1035_v5  ;;  %v922_v42 = vpop.permute.xlu2 %921 }
 0x128   : > { %vm942_vm7 = vcmp.eq.s32.totalorder %v2288_v33, %v922_v42 }
 0x129   : > { %1130 = vmatmul.bf16.gmra.mxu0 %v2486_v10  ;;  %v1910_v45 = vsel %vm942_vm7, 1.0, %v2118_v36  ;;  %vm1746_vm7 = vcmask 1046534  }
 0x12b   : > { %v458_v16 = vpop.permute.xlu1 %457 }
 0x12c   : > { %vm478_vm4 = vcmp.eq.s32.totalorder %v2288_v33, %v458_v16 }
 0x12d   : > { %v1862_v22 = vsel %vm478_vm4, 1.0, %v2118_v36  ;;  %vm1740_vm4 = vcmask 1043459  }
 0x12e   : > { %v686_v28 = vadd.f32 %v1878_v17, %v1862_v22 }
 0x12f   : > { %v2504_v35 = vpop.f32.mrf.mxu0 }
 0x130   : > { %v702_v31 = vpack.c.bf16 %v686_v28, %v686_v28  ;;  %v573_v52 = vpop.permute.xlu2 %572 }
 0x131   : > { %vm591_vm9 = vcmp.eq.s32.totalorder %v2288_v33, %v573_v52 }
 0x132   : > { %v830_v54 = vunpack.c.l.bf16 %v702_v31  ;;  %v1879_v15 = vsel %vm591_vm9, 1.0, %v2118_v36  ;;  %vm1772_vm9 = vcmask 23552  }
 0x133   : > { %v687_v59 = vadd.f32 %v1879_v15, %v1863_v29 }
 0x134   : > { %v862_v37 = vadd.f32 %v1894_v44, %v830_v54  ;;  %v743_v38 = vpop.permute.xlu1 %742 }
 0x135   : > { %vm765_vm6 = vcmp.eq.s32.totalorder %v2288_v33, %v743_v38  ;;  %v703_v7 = vpack.c.bf16 %v687_v59, %v687_v59 }
 0x136   : > { %v1893_v1 = vsel %vm765_vm6, 1.0, %v2118_v36  ;;  %v878_v32 = vpack.c.bf16 %v862_v37, %v862_v37  ;;  %1956 = vmatmul.msk.bf16.gmra.mxu1 %vm1174_vm3, %v2263_v23  ;;  %vm1744_vm6 = vcmask 1045509  }
 0x137   : > { %v861_v41 = vadd.f32 %v1893_v1, %v829_v20  ;;  %v2510_v46 = vpop.f32.mrf.mxu0  ;;  %v831_v62 = vunpack.c.l.bf16 %v703_v7 }
 0x138   : > { %v1006_v18 = vunpack.c.l.bf16 %v878_v32 }
 0x139   : > { %v877_v34 = vpack.c.bf16 %v861_v41, %v861_v41  ;;  %v749_v39 = vpop.permute.xlu2 %748 }
 0x13a   : > { %v1038_v2 = vadd.f32 %v1910_v45, %v1006_v18  ;;  %vm767_vm12 = vcmp.eq.s32.totalorder %v2288_v33, %v749_v39 }
 0x13b   : > { %v1005_v48 = vunpack.c.l.bf16 %v877_v34  ;;  %v1895_v4 = vsel %vm767_vm12, 1.0, %v2118_v36 }
 0x13c   : > { %v863_v25 = vadd.f32 %v1895_v4, %v831_v62 }
 0x13d   : > { %v919_v47 = vpop.permute.xlu1 %918 }
 0x13e   : > { %vm941_vm8 = vcmp.eq.s32.totalorder %v2288_v33, %v919_v47  ;;  %v879_v12 = vpack.c.bf16 %v863_v25, %v863_v25 }
 0x13f   : > { %v1909_v49 = vsel %vm941_vm8, 1.0, %v2118_v36  ;;  %v1111_v57 = vpop.f32.mrf.mxu0  ;;  %vm1748_vm8 = vcmask 1047559  }
 0x140   : > { %v1037_v51 = vadd.f32 %v1909_v49, %v1005_v48  ;;  %v1007_v28 = vunpack.c.l.bf16 %v879_v12  ;;  %v2027_v48 = vld [vmem:[%s2699_s6 + $0x8] sm:$0xff]  ;;  %v2026_v49 = vld [vmem:[%s2699_s6] sm:$0xff] }
 0x141   : > { %1484 = vmatpush.bf16.msrb.mxu1 %v2027_v48 }
 0x142   : > { %v2518_v50 = vpack.c.bf16 %v1038_v2, %v1037_v51  ;;  %v928_v9 = vpop.permute.xlu2 %927 }
 0x143   : > { %vm944_vm15 = vcmp.eq.s32.totalorder %v2288_v33, %v928_v9 }
 0x144   : > { %1135 = vmatmul.bf16.gmra.mxu0 %v2518_v50  ;;  %v1912_v26 = vsel %vm944_vm15, 1.0, %v2118_v36 }
 0x145   : > { %1485 = vmatpush.bf16.msrb.mxu1 %v2026_v49 }
 0x146   : > { %v464_v55 = vpop.permute.xlu1 %463  ;;  %1957 = vmatmul.msk.bf16.gmra.mxu1 %vm1174_vm3, %v2255_v19 }
 0x147   : > { %vm480_vm11 = vcmp.eq.s32.totalorder %v2288_v33, %v464_v55  ;;  %v1113_v3 = vpop.f32.mrf.mxu0  ;;  %v2573_v55 = vld [vmem:[%s2697_s4] ss:$0 sm:$0xff] }
 0x148   : > { %v1864_v63 = vsel %vm480_vm11, 1.0, %v2118_v36  ;;  %v1147_v1 = vpack.c.bf16 %v1113_v3, %v1111_v57 }
 0x14f   : > { %v576_v56 = vpop.permute.xlu1 %575  ;;  %v1116_v21 = vpop.f32.mrf.mxu0 }
 0x150   : > { %vm592_vm13 = vcmp.eq.s32.totalorder %v2288_v33, %v576_v56 }
 0x151   : > { %v1880_v5 = vsel %vm592_vm13, 1.0, %v2118_v36 }
 0x152   : > { %v688_v6 = vadd.f32 %v1880_v5, %v1864_v63 }
 0x154   : > { %v704_v8 = vpack.c.bf16 %v688_v6, %v688_v6 }
 0x156   : > { %v832_v11 = vunpack.c.l.bf16 %v704_v8 }
 0x157   : > { %v1118_v37 = vpop.f32.mrf.mxu0 }
 0x158   : > { %v864_v13 = vadd.f32 %v1896_v14, %v832_v11  ;;  %v925_v16 = vpop.permute.xlu1 %924  ;;  %v1148_v41 = vpack.c.bf16 %v1118_v37, %v1116_v21 }
 0x159   : > { %vm943_vm0 = vcmp.eq.s32.totalorder %v2288_v33, %v925_v16  ;;  %v1146_v33 = vpack.c.bf16 %v2510_v46, %v2504_v35 }
 0x15a   : > { %v880_v17 = vpack.c.bf16 %v864_v13, %v864_v13  ;;  %v1911_v22 = vsel %vm943_vm0, 1.0, %v2118_v36 }
 0x15b   : > { %v1039_v24 = vadd.f32 %v1911_v22, %v1007_v28 }
 0x15c   : > { %v1008_v31 = vunpack.c.l.bf16 %v880_v17 }
 0x15e   : > { %v1040_v44 = vadd.f32 %v1912_v26, %v1008_v31 }
 0x160   : > { %v2549_v54 = vpack.c.bf16 %v1040_v44, %v1039_v24 }
 0x162   : > { %1140 = vmatmul.bf16.gmra.mxu0 %v2549_v54 }
 0x16d   : > { %v1121_v38 = vpop.f32.mrf.mxu0 }
 0x172   : > { %1969 = vmatmul.msk.bf16.vlgmr.msrb.gmra.mxu0 %vm1174_vm3, %v1146_v33 }
 0x175   : > { %v1123_v36 = vpop.f32.mrf.mxu0 }
 0x176   : > { %v1149_v20 = vpack.c.bf16 %v1123_v36, %v1121_v38 }
 0x178   : > { %1972 = vmatmul.msk.bf16.vlgmr.msra.gmra.mxu2 %vm1174_vm3, %v1149_v20 }
 0x182   : > { %1970 = vmatmul.msk.bf16.gmra.mxu0 %vm1174_vm3, %v1147_v1 }
 0x183   : > { %v1208_v47 = vpop.f32.mrf.mxu1 }
 0x18b   : > { %v1126_v23 = vpop.f32.mrf.mxu0  ;;  %v1210_v2 = vpop.f32.mrf.mxu1 }
 0x192   : > { %1971 = vmatmul.msk.bf16.gmra.mxu0 %vm1174_vm3, %v1148_v41 }
 0x193   : > { %v1128_v42 = vpop.f32.mrf.mxu0  ;;  %v1213_v53 = vpop.f32.mrf.mxu1 }
 0x194   : > { %v1150_v32 = vpack.c.bf16 %v1128_v42, %v1126_v23 }
 0x196   : > { %1973 = vmatmul.msk.bf16.gmra.mxu2 %vm1174_vm3, %v1150_v32 }
 0x19b   : > { %v1215_v57 = vpop.f32.mrf.mxu1 }
 0x1a3   : > { %v1218_v63 = vpop.f32.mrf.mxu1 }
 0x1a6   : > { %v1131_v19 = vpop.f32.mrf.mxu0 }
 0x1ab   : > { %v1220_v8 = vpop.f32.mrf.mxu1 }
 0x1ae   : > { %v1133_v34 = vpop.f32.mrf.mxu0 }
 0x1af   : > { %v1151_v35 = vpack.c.bf16 %v1133_v34, %v1131_v19 }
 0x1b1   : > { %1974 = vmatmul.msk.bf16.gmra.mxu2 %vm1174_vm3, %v1151_v35 }
 0x1b3   : > { %v1223_v17 = vpop.f32.mrf.mxu1 }
 0x1bb   : > { %v1225_v38 = vpop.f32.mrf.mxu1 }
 0x1c1   : > { %v1136_v18 = vpop.f32.mrf.mxu0 }
 0x1c3   : > { %v1228_v23 = vpop.f32.mrf.mxu1 }
 0x1c9   : > { %v1138_v45 = vpop.f32.mrf.mxu0 }
 0x1ca   : > { %v1152_v46 = vpack.c.bf16 %v1138_v45, %v1136_v18 }
 0x1cb   : > { %v1230_v18 = vpop.f32.mrf.mxu1 }
 0x1cc   : > { %1975 = vmatmul.msk.bf16.gmra.mxu2 %vm1174_vm3, %v1152_v46 }
 0x1df   : > { %v1141_v0 = vpop.f32.mrf.mxu0 }
 0x1e7   : > { %v1143_v51 = vpop.f32.mrf.mxu0 }
 0x1e8   : > { %v1153_v52 = vpack.c.bf16 %v1143_v51, %v1141_v0 }
 0x1ea   : > { %1976 = vmatmul.msk.bf16.gmra.mxu2 %vm1174_vm3, %v1153_v52 }
 0x1ef   : > { %v1293_v15 = vpop.f32.mrf.mxu0 }
 0x1f0   : > { %v1294_v29 = vadd.f32 %v1293_v15, %v1208_v47  ;;  %v1233_v47 = vpop.f32.mrf.mxu3 }
 0x1f2   : > { %v1337_v39 = vadd.f32 %v2573_v55, %v1294_v29 }
 0x1f4   : > { %v1353_v56 = vmax.f32 %v1337_v39, 0.0 }
 0x1f7   : > { %v1295_v59 = vpop.f32.mrf.mxu0 }
 0x1f8   : > { %v1296_v7 = vadd.f32 %v1295_v59, %v1210_v2 }
 0x1fa   : > { %v1338_v43 = vadd.f32 %v2573_v55, %v1296_v7 }
 0x1fb   : > { %v1308_v16 = vpop.f32.mrf.mxu2 }
 0x1fc   : > { %v1354_v61 = vmax.f32 %v1338_v43, 0.0  ;;  %v1309_v1 = vadd.f32 %v1308_v16, %v1223_v17 }
 0x1fe   : > { %v2577_v62 = vpack.c.bf16 %v1354_v61, %v1353_v56  ;;  %v1343_v42 = vadd.f32 %v2573_v55, %v1309_v1 }
 0x1ff   : > { %v1298_v3 = vpop.f32.mrf.mxu0 }
 0x200   : > { %1985 = vmatmul.msk.bf16.vlgmr.msrb.gmra.mxu1 %vm1174_vm3, %v2577_v62  ;;  %v1299_v4 = vadd.f32 %v1298_v3, %v1213_v53  ;;  %v1359_v19 = vmax.f32 %v1343_v42, 0.0  ;;  %v1235_v53 = vpop.f32.mrf.mxu3 }
 0x202   : > { %v1339_v6 = vadd.f32 %v2573_v55, %v1299_v4 }
 0x203   : > { %v1310_v24 = vpop.f32.mrf.mxu2 }
 0x204   : > { %v1355_v9 = vmax.f32 %v1339_v6, 0.0  ;;  %v1311_v36 = vadd.f32 %v1310_v24, %v1225_v38 }
 0x206   : > { %v1344_v41 = vadd.f32 %v2573_v55, %v1311_v36 }
 0x207   : > { %v1300_v5 = vpop.f32.mrf.mxu0 }
 0x208   : > { %v1301_v25 = vadd.f32 %v1300_v5, %v1215_v57  ;;  %v1360_v32 = vmax.f32 %v1344_v41, 0.0  ;;  %v1238_v43 = vpop.f32.mrf.mxu3 }
 0x20a   : > { %v1340_v14 = vadd.f32 %v2573_v55, %v1301_v25  ;;  %v1372_v35 = vpack.c.bf16 %v1360_v32, %v1359_v19 }
 0x20c   : > { %v1356_v11 = vmax.f32 %v1340_v14, 0.0 }
 0x20e   : > { %v2583_v12 = vpack.c.bf16 %v1356_v11, %v1355_v9 }
 0x20f   : > { %v1303_v13 = vpop.f32.mrf.mxu0 }
 0x210   : > { %1986 = vmatmul.msk.bf16.gmra.mxu1 %vm1174_vm3, %v2583_v12  ;;  %v1304_v21 = vadd.f32 %v1303_v13, %v1218_v63  ;;  %v1240_v4 = vpop.f32.mrf.mxu3 }
 0x212   : > { %v1341_v26 = vadd.f32 %v2573_v55, %v1304_v21 }
 0x214   : > { %v1357_v44 = vmax.f32 %v1341_v26, 0.0 }
 0x217   : > { %v1305_v22 = vpop.f32.mrf.mxu0 }
 0x218   : > { %v1306_v28 = vadd.f32 %v1305_v22, %v1220_v8  ;;  %v1243_v13 = vpop.f32.mrf.mxu3 }
 0x219   : > { %v1313_v20 = vpop.f32.mrf.mxu2 }
 0x21a   : > { %v1342_v31 = vadd.f32 %v2573_v55, %v1306_v28  ;;  %v1314_v46 = vadd.f32 %v1313_v20, %v1228_v23 }
 0x21c   : > { %v1358_v37 = vmax.f32 %v1342_v31, 0.0  ;;  %v1345_v0 = vadd.f32 %v2573_v55, %v1314_v46 }
 0x21e   : > { %v1371_v33 = vpack.c.bf16 %v1358_v37, %v1357_v44  ;;  %v1361_v51 = vmax.f32 %v1345_v0, 0.0 }
 0x220   : > { %1987 = vmatmul.msk.bf16.gmra.mxu1 %vm1174_vm3, %v1371_v33  ;;  %v1245_v21 = vpop.f32.mrf.mxu3 }
 0x221   : > { %v1315_v34 = vpop.f32.mrf.mxu2 }
 0x222   : > { %v1316_v45 = vadd.f32 %v1315_v34, %v1230_v18 }
 0x224   : > { %v1346_v49 = vadd.f32 %v2573_v55, %v1316_v45 }
 0x226   : > { %v1362_v2 = vmax.f32 %v1346_v49, 0.0 }
 0x228   : > { %v1373_v52 = vpack.c.bf16 %v1362_v2, %v1361_v51 }
 0x230   : > { %1988 = vmatmul.msk.bf16.gmra.mxu1 %vm1174_vm3, %v1372_v35 }
 0x234   : > { %v1318_v48 = vpop.f32.mrf.mxu2 }
 0x235   : > { %v1319_v57 = vadd.f32 %v1318_v48, %v1233_v47 }
 0x237   : > { %v1347_v39 = vadd.f32 %v2573_v55, %v1319_v57 }
 0x239   : > { %v1363_v56 = vmax.f32 %v1347_v39, 0.0 }
 0x23c   : > { %v1320_v15 = vpop.f32.mrf.mxu2 }
 0x23d   : > { %v1321_v29 = vadd.f32 %v1320_v15, %v1235_v53 }
 0x23f   : > { %v1348_v59 = vadd.f32 %v2573_v55, %v1321_v29 }
 0x240   : > { %1989 = vmatmul.msk.bf16.gmra.mxu1 %vm1174_vm3, %v1373_v52 }
 0x241   : > { %v1364_v7 = vmax.f32 %v1348_v59, 0.0 }
 0x243   : > { %v1374_v61 = vpack.c.bf16 %v1364_v7, %v1363_v56 }
 0x24f   : > { %v1323_v63 = vpop.f32.mrf.mxu2 }
 0x250   : > { %1990 = vmatmul.msk.bf16.gmra.mxu1 %vm1174_vm3, %v1374_v61  ;;  %v1324_v3 = vadd.f32 %v1323_v63, %v1238_v43  ;;  %v1723_v43 = vld [vmem:[%s2701_s8 + $0x18] sm:$0xff] }
 0x252   : > { %v1349_v6 = vadd.f32 %v2573_v55, %v1324_v3 }
 0x254   : > { %v1365_v14 = vmax.f32 %v1349_v6, 0.0 }
 0x257   : > { %v1325_v5 = vpop.f32.mrf.mxu2 }
 0x258   : > { %v1326_v25 = vadd.f32 %v1325_v5, %v1240_v4 }
 0x25a   : > { %v1350_v8 = vadd.f32 %v2573_v55, %v1326_v25 }
 0x25c   : > { %v1366_v9 = vmax.f32 %v1350_v8, 0.0 }
 0x25e   : > { %v1375_v11 = vpack.c.bf16 %v1366_v9, %v1365_v14 }
 0x260   : > { %1991 = vmatmul.msk.bf16.gmra.mxu1 %vm1174_vm3, %v1375_v11 }
 0x26d   : > { %v1328_v16 = vpop.f32.mrf.mxu2 }
 0x26e   : > { %v1329_v17 = vadd.f32 %v1328_v16, %v1243_v13 }
 0x270   : > { %v1351_v26 = vadd.f32 %v2573_v55, %v1329_v17 }
 0x272   : > { %v1367_v24 = vmax.f32 %v1351_v26, 0.0 }
 0x275   : > { %v1330_v22 = vpop.f32.mrf.mxu2 }
 0x276   : > { %v1331_v28 = vadd.f32 %v1330_v22, %v1245_v21 }
 0x278   : > { %v1352_v31 = vadd.f32 %v2573_v55, %v1331_v28  ;;  %v2025_v55 = vld [vmem:[%s2698_s5 + $0x8] sm:$0xff] }
 0x279   : > { %1569 = vmatpush.bf16.msrb.mxu2 %v2025_v55 }
 0x27a   : > { %v1368_v44 = vmax.f32 %v1352_v31, 0.0 }
 0x27c   : > { %v1376_v37 = vpack.c.bf16 %v1368_v44, %v1367_v24 }
 0x27d   : > { %v1487_v45 = vpop.f32.mrf.mxu1 }
 0x27e   : > { %1377 = vmatpush.bf16.msrb.mxu3 %v1376_v37  ;;  %1992 = vmatmul.msk.bf16.gmra.mxu1 %vm1174_vm3, %v1376_v37 }
 0x282   : > { %1378 = vmatpush.bf16.msrb.mxu3 %v1375_v11 }
 0x285   : > { %v1489_v48 = vpop.f32.mrf.mxu1 }
 0x286   : > { %1379 = vmatpush.bf16.msrb.mxu3 %v1374_v61 }
 0x28a   : > { %1380 = vmatpush.bf16.msrb.mxu3 %v1373_v52  ;;  %v2632_v52 = vld [vmem:[%s2700_s7] ss:$0 sm:$0xff] }
 0x28d   : > { %v1492_v49 = vpop.f32.mrf.mxu1 }
 0x28e   : > { %1381 = vmatpush.bf16.msrb.mxu3 %v1372_v35 }
 0x292   : > { %1382 = vmatpush.bf16.msrb.mxu3 %v1371_v33 }
 0x295   : > { %v1494_v2 = vpop.f32.mrf.mxu1 }
 0x296   : > { %1383 = vmatpush.bf16.msrb.mxu3 %v2583_v12 }
 0x29a   : > { %1384 = vmatpush.bf16.msrb.mxu3 %v2577_v62  ;;  %v2024_v62 = vld [vmem:[%s2698_s5] sm:$0xff] }
 0x29b   : > { %1570 = vmatpush.bf16.msrb.mxu2 %v2024_v62 }
 0x29d   : > { %1385 = vmatmul.bf16.vlgmr.msrb.gmra.mxu3 %v2356_v30  ;;  %v1497_v39 = vpop.f32.mrf.mxu1 }
 0x29e   : > { %1764 = vmatpush.msra.mxu3 %v1723_v43 }
 0x2a5   : > { %v1499_v5 = vpop.f32.mrf.mxu1 }
 0x2ad   : > { %1390 = vmatmul.bf16.gmra.mxu3 %v2388_v58  ;;  %v1502_v22 = vpop.f32.mrf.mxu1 }
 0x2bd   : > { %1395 = vmatmul.bf16.gmra.mxu3 %v2412_v27 }
 0x2cd   : > { %1400 = vmatmul.bf16.gmra.mxu3 %v2443_v60 }
 0x2dd   : > { %1405 = vmatmul.bf16.gmra.mxu3 %v2465_v40 }
 0x2ed   : > { %1410 = vmatmul.bf16.gmra.mxu3 %v2486_v10 }
 0x2fd   : > { %1415 = vmatmul.bf16.gmra.mxu3 %v2518_v50 }
 0x30d   : > { %1420 = vmatmul.bf16.gmra.mxu3 %v2549_v54 }
 0x320   : > { %v1386_v30 = vpop.f32.mrf.mxu3 }
 0x328   : > { %v1388_v58 = vpop.f32.mrf.mxu3 }
 0x329   : > { %v1426_v27 = vpack.c.bf16 %v1388_v58, %v1386_v30 }
 0x32b   : > { %2001 = vmatmul.msk.bf16.vlgmr.msrb.gmra.mxu2 %vm1174_vm3, %v1426_v27 }
 0x330   : > { %v1391_v12 = vpop.f32.mrf.mxu3 }
 0x338   : > { %v1393_v60 = vpop.f32.mrf.mxu3 }
 0x339   : > { %v1427_v38 = vpack.c.bf16 %v1393_v60, %v1391_v12 }
 0x33b   : > { %2002 = vmatmul.msk.bf16.gmra.mxu2 %vm1174_vm3, %v1427_v38  ;;  %v1504_v38 = vpop.f32.mrf.mxu1 }
 0x340   : > { %v1396_v40 = vpop.f32.mrf.mxu3 }
 0x348   : > { %v1398_v10 = vpop.f32.mrf.mxu3 }
 0x349   : > { %v1428_v33 = vpack.c.bf16 %v1398_v10, %v1396_v40 }
 0x34b   : > { %2003 = vmatmul.msk.bf16.gmra.mxu2 %vm1174_vm3, %v1428_v33 }
 0x350   : > { %v1401_v36 = vpop.f32.mrf.mxu3 }
 0x358   : > { %v1403_v20 = vpop.f32.mrf.mxu3 }
 0x359   : > { %v1429_v50 = vpack.c.bf16 %v1403_v20, %v1401_v36 }
 0x35b   : > { %2004 = vmatmul.msk.bf16.gmra.mxu2 %vm1174_vm3, %v1429_v50  ;;  %v1722_v50 = vld [vmem:[%s2701_s8 + $0x10] sm:$0xff] }
 0x35c   : > { %1765 = vmatpush.msra.mxu3 %v1722_v50 }
 0x360   : > { %v1406_v54 = vpop.f32.mrf.mxu3 }
 0x368   : > { %v1408_v1 = vpop.f32.mrf.mxu3 }
 0x369   : > { %v1430_v23 = vpack.c.bf16 %v1408_v1, %v1406_v54 }
 0x36b   : > { %2005 = vmatmul.msk.bf16.gmra.mxu2 %vm1174_vm3, %v1430_v23 }
 0x370   : > { %v1411_v41 = vpop.f32.mrf.mxu3 }
 0x378   : > { %v1413_v42 = vpop.f32.mrf.mxu3 }
 0x379   : > { %v1431_v32 = vpack.c.bf16 %v1413_v42, %v1411_v41 }
 0x37b   : > { %2006 = vmatmul.msk.bf16.gmra.mxu2 %vm1174_vm3, %v1431_v32 }
 0x380   : > { %v1416_v19 = vpop.f32.mrf.mxu3 }
 0x388   : > { %v1418_v34 = vpop.f32.mrf.mxu3 }
 0x389   : > { %v1432_v35 = vpack.c.bf16 %v1418_v34, %v1416_v19 }
 0x38b   : > { %2007 = vmatmul.msk.bf16.gmra.mxu2 %vm1174_vm3, %v1432_v35  ;;  %v1507_v35 = vpop.f32.mrf.mxu1 }
 0x390   : > { %v1421_v18 = vpop.f32.mrf.mxu3 }
 0x398   : > { %v1423_v46 = vpop.f32.mrf.mxu3 }
 0x399   : > { %v1433_v47 = vpack.c.bf16 %v1423_v46, %v1421_v18 }
 0x39b   : > { %2008 = vmatmul.msk.bf16.gmra.mxu2 %vm1174_vm3, %v1433_v47 }
 0x3ae   : > { %v1572_v0 = vpop.f32.mrf.mxu2 }
 0x3af   : > { %v1573_v51 = vadd.f32 %v1572_v0, %v1487_v45 }
 0x3b1   : > { %v1616_v53 = vadd.f32 %v2632_v52, %v1573_v51 }
 0x3b3   : > { %v1632_v57 = vmax.f32 %v1616_v53, 0.0 }
 0x3b5   : > { %v1648_v56 = vsel %vm1174_vm3, %v1632_v57, 0.0 }
 0x3b6   : > { %v1574_v15 = vpop.f32.mrf.mxu2 }
 0x3b7   : > { %v1575_v29 = vadd.f32 %v1574_v15, %v1489_v48 }
 0x3b9   : > { %v1617_v59 = vadd.f32 %v2632_v52, %v1575_v29  ;;  %v1509_v29 = vpop.f32.mrf.mxu1 }
 0x3bb   : > { %v1633_v7 = vmax.f32 %v1617_v59, 0.0 }
 0x3bd   : > { %v1649_v61 = vsel %vm1174_vm3, %v1633_v7, 0.0 }
 0x3be   : > { %v1650_v63 = vadd.f32 %v1649_v61, %v1648_v56  ;;  %v1577_v3 = vpop.f32.mrf.mxu2 }
 0x3bf   : > { %v1578_v4 = vadd.f32 %v1577_v3, %v1492_v49 }
 0x3c0   : > { %v1651_v25 = vrot.slane %v1650_v63, 4 }
 0x3c1   : > { %v1618_v6 = vadd.f32 %v2632_v52, %v1578_v4  ;;  %v1512_v3 = vpop.f32.mrf.mxu1 }
 0x3c2   : > { %v1652_v13 = vadd.f32 %v1651_v25, %v1650_v63 }
 0x3c3   : > { %v1634_v9 = vmax.f32 %v1618_v6, 0.0 }
 0x3c4   : > { %v1653_v26 = vrot.slane %v1652_v13, 2 }
 0x3c5   : > { %v1657_v17 = vsel %vm1174_vm3, %v1634_v9, 0.0 }
 0x3c6   : > { %v1579_v8 = vpop.f32.mrf.mxu2  ;;  %v1654_v37 = vadd.f32 %v1653_v26, %v1652_v13 }
 0x3c7   : > { %v1580_v14 = vadd.f32 %v1579_v8, %v1494_v2  ;;  %v1721_v8 = vld [vmem:[%s2701_s8 + $0x8] sm:$0xff] }
 0x3c8   : > { %v1655_v58 = vrot.slane %v1654_v37, 1  ;;  %1766 = vmatpush.msra.mxu3 %v1721_v8 }
 0x3c9   : > { %v1619_v11 = vadd.f32 %v2632_v52, %v1580_v14 }
 0x3ca   : > { %v1656_v36 = vadd.f32 %v1655_v58, %v1654_v37 }
 0x3cb   : > { %v1635_v16 = vmax.f32 %v1619_v11, 0.0  ;;  %v1514_v11 = vpop.f32.mrf.mxu1 }
 0x3cd   : > { %v1658_v21 = vsel %vm1174_vm3, %v1635_v16, 0.0 }
 0x3ce   : > { %v1659_v28 = vadd.f32 %v1658_v21, %v1657_v17  ;;  %v1582_v31 = vpop.f32.mrf.mxu2 }
 0x3cf   : > { %v1583_v44 = vadd.f32 %v1582_v31, %v1497_v39 }
 0x3d0   : > { %v1660_v24 = vrot.slane %v1659_v28, 4 }
 0x3d1   : > { %v1620_v30 = vadd.f32 %v2632_v52, %v1583_v44 }
 0x3d2   : > { %v1661_v55 = vadd.f32 %v1660_v24, %v1659_v28 }
 0x3d3   : > { %v1636_v10 = vmax.f32 %v1620_v30, 0.0  ;;  %v1517_v16 = vpop.f32.mrf.mxu1 }
 0x3d4   : > { %v1662_v62 = vrot.slane %v1661_v55, 2 }
 0x3d5   : > { %v1666_v23 = vsel %vm1174_vm3, %v1636_v10, 0.0 }
 0x3d6   : > { %v1663_v27 = vadd.f32 %v1662_v62, %v1661_v55  ;;  %v1584_v12 = vpop.f32.mrf.mxu2 }
 0x3d7   : > { %v1585_v60 = vadd.f32 %v1584_v12, %v1499_v5 }
 0x3d8   : > { %v1664_v40 = vrot.slane %v1663_v27, 1 }
 0x3d9   : > { %v1621_v33 = vadd.f32 %v2632_v52, %v1585_v60 }
 0x3da   : > { %v1665_v20 = vadd.f32 %v1664_v40, %v1663_v27  ;;  %v1720_v40 = vld [vmem:[%s2701_s8] sm:$0xff] }
 0x3db   : > { %v1637_v54 = vmax.f32 %v1621_v33, 0.0  ;;  %v1519_v37 = vpop.f32.mrf.mxu1  ;;  %1767 = vmatpush.msra.mxu3 %v1720_v40 }
 0x3dc   : > { %v1737_v1 = vsel %vm1736_vm1, %v1665_v20, %v1656_v36 }
 0x3dd   : > { %v1667_v41 = vsel %vm1174_vm3, %v1637_v54, 0.0 }
 0x3de   : > { %v1668_v42 = vadd.f32 %v1667_v41, %v1666_v23  ;;  %v1587_v32 = vpop.f32.mrf.mxu2 }
 0x3df   : > { %v1588_v19 = vadd.f32 %v1587_v32, %v1502_v22 }
 0x3e0   : > { %v1669_v34 = vrot.slane %v1668_v42, 4 }
 0x3e1   : > { %v1622_v46 = vadd.f32 %v2632_v52, %v1588_v19 }
 0x3e2   : > { %v1670_v18 = vadd.f32 %v1669_v34, %v1668_v42 }
 0x3e3   : > { %v1638_v2 = vmax.f32 %v1622_v46, 0.0 }
 0x3e4   : > { %v1671_v45 = vrot.slane %v1670_v18, 2 }
 0x3e5   : > { %v1675_v59 = vsel %vm1174_vm3, %v1638_v2, 0.0 }
 0x3e6   : > { %v1672_v47 = vadd.f32 %v1671_v45, %v1670_v18  ;;  %v1589_v48 = vpop.f32.mrf.mxu2 }
 0x3e7   : > { %v1590_v49 = vadd.f32 %v1589_v48, %v1504_v38 }
 0x3e8   : > { %v1673_v0 = vrot.slane %v1672_v47, 1 }
 0x3e9   : > { %v1623_v51 = vadd.f32 %v2632_v52, %v1590_v49 }
 0x3ea   : > { %v1674_v53 = vadd.f32 %v1673_v0, %v1672_v47 }
 0x3eb   : > { %v1639_v15 = vmax.f32 %v1623_v51, 0.0 }
 0x3ec   : > { %v1739_v57 = vsel %vm1738_vm2, %v1674_v53, %v1737_v1  ;;  %v1522_v1 = vpop.f32.mrf.mxu1 }
 0x3ed   : > { %v1676_v39 = vsel %vm1174_vm3, %v1639_v15, 0.0 }
 0x3ee   : > { %v1677_v7 = vadd.f32 %v1676_v39, %v1675_v59  ;;  %v1592_v43 = vpop.f32.mrf.mxu2 }
 0x3ef   : > { %v1593_v26 = vadd.f32 %v1592_v43, %v1507_v35 }
 0x3f0   : > { %v1678_v56 = vrot.slane %v1677_v7, 4 }
 0x3f1   : > { %v1624_v55 = vadd.f32 %v2632_v52, %v1593_v26 }
 0x3f2   : > { %v1679_v61 = vadd.f32 %v1678_v56, %v1677_v7 }
 0x3f3   : > { %v1640_v38 = vmax.f32 %v1624_v55, 0.0  ;;  %v2105_v55 = vld [vmem:[%s2702_s9] ss:$0 sm:$0xff] }
 0x3f4   : > { %v1680_v63 = vrot.slane %v1679_v61, 2  ;;  %v1524_v2 = vpop.f32.mrf.mxu1 }
 0x3f5   : > { %v1684_v23 = vsel %vm1174_vm3, %v1640_v38, 0.0 }
 0x3f6   : > { %v1681_v4 = vadd.f32 %v1680_v63, %v1679_v61  ;;  %v1594_v5 = vpop.f32.mrf.mxu2 }
 0x3f7   : > { %v1595_v17 = vadd.f32 %v1594_v5, %v1509_v29 }
 0x3f8   : > { %v1682_v6 = vrot.slane %v1681_v4, 1 }
 0x3f9   : > { %v1625_v31 = vadd.f32 %v2632_v52, %v1595_v17 }
 0x3fa   : > { %v1683_v25 = vadd.f32 %v1682_v6, %v1681_v4 }
 0x3fb   : > { %v1641_v30 = vmax.f32 %v1625_v31, 0.0 }
 0x3fc   : > { %v2659_v14 = vsel %vm1740_vm4, %v1683_v25, %v1739_v57 }
 0x3fd   : > { %v1685_v36 = vsel %vm1174_vm3, %v1641_v30, 0.0 }
 0x3fe   : > { %v1597_v9 = vpop.f32.mrf.mxu2  ;;  %v1686_v41 = vadd.f32 %v1685_v36, %v1684_v23 }
 0x3ff   : > { %v1598_v28 = vadd.f32 %v1597_v9, %v1512_v3 }
 0x400   : > { %v1687_v45 = vrot.slane %v1686_v41, 4 }
 0x401   : > { %v1626_v62 = vadd.f32 %v2632_v52, %v1598_v28 }
 0x402   : > { %v1688_v49 = vadd.f32 %v1687_v45, %v1686_v41 }
 0x403   : > { %v1642_v10 = vmax.f32 %v1626_v62, 0.0 }
 0x404   : > { %v1689_v57 = vrot.slane %v1688_v49, 2 }
 0x405   : > { %v1693_v42 = vsel %vm1174_vm3, %v1642_v10, 0.0 }
 0x406   : > { %v1599_v13 = vpop.f32.mrf.mxu2  ;;  %v1690_v61 = vadd.f32 %v1689_v57, %v1688_v49 }
 0x407   : > { %v1600_v22 = vadd.f32 %v1599_v13, %v1514_v11 }
 0x408   : > { %v1691_v8 = vrot.slane %v1690_v61, 1 }
 0x409   : > { %v1627_v44 = vadd.f32 %v2632_v52, %v1600_v22 }
 0x40a   : > { %v1692_v17 = vadd.f32 %v1691_v8, %v1690_v61 }
 0x40b   : > { %v1643_v12 = vmax.f32 %v1627_v44, 0.0 }
 0x40c   : > { %v1743_v28 = vsel %vm1742_vm5, %v1692_v17, %v2659_v14 }
 0x40d   : > { %v1694_v50 = vsel %vm1174_vm3, %v1643_v12, 0.0 }
 0x40e   : > { %v1602_v21 = vpop.f32.mrf.mxu2  ;;  %v1695_v19 = vadd.f32 %v1694_v50, %v1693_v42 }
 0x40f   : > { %v1603_v24 = vadd.f32 %v1602_v21, %v1517_v16 }
 0x410   : > { %v1696_v47 = vrot.slane %v1695_v19, 4 }
 0x411   : > { %v1628_v58 = vadd.f32 %v2632_v52, %v1603_v24 }
 0x412   : > { %v1697_v51 = vadd.f32 %v1696_v47, %v1695_v19 }
 0x413   : > { %v1644_v20 = vmax.f32 %v1628_v58, 0.0 }
 0x414   : > { %v1698_v7 = vrot.slane %v1697_v51, 2 }
 0x415   : > { %v1702_v34 = vsel %vm1174_vm3, %v1644_v20, 0.0 }
 0x416   : > { %v1604_v27 = vpop.f32.mrf.mxu2  ;;  %v1699_v4 = vadd.f32 %v1698_v7, %v1697_v51 }
 0x417   : > { %v1605_v60 = vadd.f32 %v1604_v27, %v1519_v37 }
 0x418   : > { %v1700_v9 = vrot.slane %v1699_v4, 1 }
 0x419   : > { %v1629_v33 = vadd.f32 %v2632_v52, %v1605_v60 }
 0x41b   : > { %v1645_v54 = vmax.f32 %v1629_v33, 0.0 }
 0x41d   : > { %v1703_v32 = vsel %vm1174_vm3, %v1645_v54, 0.0 }
 0x41e   : > { %v1607_v35 = vpop.f32.mrf.mxu2  ;;  %v1704_v18 = vadd.f32 %v1703_v32, %v1702_v34 }
 0x41f   : > { %v1608_v46 = vadd.f32 %v1607_v35, %v1522_v1 }
 0x420   : > { %v1705_v48 = vrot.slane %v1704_v18, 4 }
 0x421   : > { %v1630_v0 = vadd.f32 %v2632_v52, %v1608_v46 }
 0x422   : > { %v1706_v15 = vadd.f32 %v1705_v48, %v1704_v18 }
 0x423   : > { %v1646_v59 = vmax.f32 %v1630_v0, 0.0 }
 0x424   : > { %v1707_v43 = vrot.slane %v1706_v15, 2 }
 0x425   : > { %v1711_v63 = vsel %vm1174_vm3, %v1646_v59, 0.0 }
 0x426   : > { %v1609_v53 = vpop.f32.mrf.mxu2  ;;  %v1708_v6 = vadd.f32 %v1707_v43, %v1706_v15 }
 0x427   : > { %v1610_v29 = vadd.f32 %v1609_v53, %v1524_v2 }
 0x428   : > { %v1709_v13 = vrot.slane %v1708_v6, 1 }
 0x429   : > { %v1631_v39 = vadd.f32 %v2632_v52, %v1610_v29  ;;  %v1701_v52 = vadd.f32 %v1700_v9, %v1699_v4 }
 0x42a   : > { %v1710_v22 = vadd.f32 %v1709_v13, %v1708_v6 }
 0x42b   : > { %v1647_v56 = vmax.f32 %v1631_v39, 0.0  ;;  %v1745_v24 = vsel %vm1744_vm6, %v1701_v52, %v1743_v28 }
 0x42c   : > { %v1747_v44 = vsel %vm1746_vm7, %v1710_v22, %v1745_v24 }
 0x42d   : > { %v1712_v3 = vsel %vm1174_vm3, %v1647_v56, 0.0 }
 0x42e   : > { %v1713_v5 = vadd.f32 %v1712_v3, %v1711_v63 }
 0x430   : > { %v1714_v25 = vrot.slane %v1713_v5, 4 }
 0x432   : > { %v1715_v11 = vadd.f32 %v1714_v25, %v1713_v5 }
 0x434   : > { %v1716_v16 = vrot.slane %v1715_v11, 2 }
 0x436   : > { %v1717_v21 = vadd.f32 %v1716_v16, %v1715_v11 }
 0x438   : > { %v1718_v26 = vrot.slane %v1717_v21, 1 }
 0x43a   : > { %v1719_v31 = vadd.f32 %v1718_v26, %v1717_v21 }
 0x43c   : > { %v1749_v37 = vsel %vm1748_vm8, %v1719_v31, %v1747_v44 }
 0x43d   : > { %2009 = vmatmul.msk.f32.vlgmr.msra.gmra.mxu3 %vm1174_vm3, %v1749_v37 }
 0x4c0   : > { %v1769_v62 = vpop.f32.mrf.mxu3 }
 0x4c1   : > { %v1770_v14 = vadd.f32 %v2105_v55, %v1769_v62 }
 0x4c3   : > { %1773 = vst.msk [vmem:[%s381_s21] sm:$0xff] %vm1772_vm9, %v1770_v14 }
 0x4c4 PF: > { %s20_s13 = sadd.s32 1, %s2112_s13  }
 0x4c5   : > { %p17_p5 = scmp.ge.s32.totalorder %s20_s13, 4  }
 0x4c7   :  { %19 = sbr.rel (!%p17_p5) target bundleno = 1 (0x1), region = 93 }

</bundles_post_ra>
